<compile_context>
chip_gen: v7x
topology: tpu7x:2x2x1
jax: 0.10.0
libtpu: 0.0.40
codegen_flags: <defaults>
</compile_context>

<pallas_src>
import functools
import math

import jax
import jax.numpy as jnp
from jax.experimental import pallas as pl
from jax.experimental.pallas import tpu as pltpu


# ----------------------------- shared math helpers -----------------------------

_ERF_A1 = 0.254829592
_ERF_A2 = -0.284496736
_ERF_A3 = 1.421413741
_ERF_A4 = -1.453152027
_ERF_A5 = 1.061405429
_ERF_P = 0.3275911


def _erf(x, *, in_kernel=False):
    # Abramowitz & Stegun 7.1.26 (|err| <= 1.5e-7); exp on the EUP.
    sgn = jnp.where(x >= 0.0, 1.0, -1.0)
    ax = jnp.abs(x)
    denom = 1.0 + _ERF_P * ax
    # Inside the kernel, move the divide to the EUP (approx reciprocal).
    t = pl.reciprocal(denom, approx=True) if in_kernel else 1.0 / denom
    poly = t * (_ERF_A1 + t * (_ERF_A2 + t * (_ERF_A3 + t * (_ERF_A4 + t * _ERF_A5))))
    return sgn * (1.0 - poly * jnp.exp(-ax * ax))


def _gelu(x, *, in_kernel=False):
    # exact (erf) GELU, matching torch.nn.functional.gelu default
    return 0.5 * x * (1.0 + _erf(x * 0.7071067811865476, in_kernel=in_kernel))


def _layernorm(x, gamma, beta, eps=1e-5):
    mean = jnp.mean(x, axis=-1, keepdims=True)
    var = jnp.mean((x - mean) * (x - mean), axis=-1, keepdims=True)
    xhat = (x - mean) * jax.lax.rsqrt(var + eps)
    return xhat * gamma + beta


def _matmul_nt(a, w):
    # a: (N, K), w: (M, K)  ->  (N, M)   i.e. a @ w.T  (PyTorch Linear convention)
    return jax.lax.dot_general(
        a, w, (((1,), (1,)), ((), ())), preferred_element_type=jnp.float32
    )


# --------------------------------- Pallas kernel --------------------------------


def s5_block_kernel(
    x_ref,                       # (T, D) f32        (batch dim squeezed by BlockSpec)
    ln1_g_ref, ln1_b_ref,        # (1, D) f32
    lb_re_ref, lb_im_ref,        # (1, P) f32        Lambda_bar real / imag
    bbar_ref,                    # (2P, D) bf16      [B_bar_re ; B_bar_im]
    c_ref,                       # (D, 2P) bf16      [C_re | -C_im]
    d_ref,                       # (1, D) f32        feedthrough
    ln2_g_ref, ln2_b_ref,        # (1, D) f32
    wenc_ref,                    # (2*Dff, D) bf16   ff_enc weight (single matmul)
    wdec_ref,                    # (D, Dff) bf16     ff_dec weight
    out_ref,                     # (T, D) f32
    st_re_ref, st_im_ref,        # (1, P) f32        SSM state carry across chunks
):
    seq_tile = x_ref.shape[0]
    p = lb_re_ref.shape[-1]
    dff = wdec_ref.shape[-1]

    # ---- reset the SSM state at the start of every sequence (chunk 0) ----
    @pl.when(pl.program_id(1) == 0)
    def _init():
        st_re_ref[...] = jnp.zeros_like(st_re_ref)
        st_im_ref[...] = jnp.zeros_like(st_im_ref)

    x = x_ref[...]                                        # (T, D) f32

    # ---- attn_norm + residual capture ----
    fx = _layernorm(x, ln1_g_ref[...], ln1_b_ref[...])
    res = fx
    fx16 = fx.astype(jnp.bfloat16)

    # ---- S5 input projection: ONE fused matmul -> [Bu_re | Bu_im] ----
    bu = _matmul_nt(fx16, bbar_ref[...])                  # (T, 2P) f32 accum
    bu_re = bu[:, :p]
    bu_im = bu[:, p:]

    # ---- chunked diagonal complex recurrence (carry from previous chunk) ----
    lb_re = lb_re_ref[...]                                # (1, P)
    lb_im = lb_im_ref[...]
    st_re = st_re_ref[...]
    st_im = st_im_ref[...]
    xs_re_l, xs_im_l = [], []
    for t in range(seq_tile):                             # small static unroll (= seq_tile)
        br = bu_re[t:t + 1, :]
        bi = bu_im[t:t + 1, :]
        nr = lb_re * st_re - lb_im * st_im + br
        ni = lb_re * st_im + lb_im * st_re + bi
        st_re, st_im = nr, ni
        xs_re_l.append(st_re)
        xs_im_l.append(st_im)
    st_re_ref[...] = st_re
    st_im_ref[...] = st_im
    # materialize the whole chunk of states once, lane-packed [re | im] -> (T, 2P)
    xs = jnp.concatenate(
        [jnp.concatenate(xs_re_l, axis=0), jnp.concatenate(xs_im_l, axis=0)],
        axis=-1)

    # ---- S5 output projection (ONE fused matmul) + feedthrough ----
    # y = 2*Re(C x) + D*u  ==  xs_packed @ [C_re | -C_im]^T * 2 + u * D
    y = 2.0 * _matmul_nt(xs.astype(jnp.bfloat16), c_ref[...]) + fx * d_ref[...]

    # ---- GELU + residual (attn_dropout = identity) ----
    x1 = _gelu(y, in_kernel=True) + res

    # ---- ff_norm + fused GEGLU FFN + residual (ff_dropout = identity) ----
    fx2 = _layernorm(x1, ln2_g_ref[...], ln2_b_ref[...])
    hh = _matmul_nt(fx2.astype(jnp.bfloat16), wenc_ref[...])   # (T, 2*Dff)
    h = hh[:, :dff] * _gelu(hh[:, dff:], in_kernel=True)       # GEGLU (value * gelu(gate))
    out_ref[...] = _matmul_nt(h.astype(jnp.bfloat16), wdec_ref[...]) + fx2


# ------------------------------ parameter packing --------------------------------


def _discretize(params, step_scale):
    """ZOH discretization of the diagonal complex SSM (tiny glue, plain JAX)."""
    dt = step_scale * jnp.exp(params["log_step"])          # (1, P)
    lr = params["lam_re"] * dt
    li = params["lam_im"] * dt
    mag = jnp.exp(lr)
    lb_re = mag * jnp.cos(li)                              # Lambda_bar = exp(Lambda dt)
    lb_im = mag * jnp.sin(li)
    denom = params["lam_re"] ** 2 + params["lam_im"] ** 2
    num_re = lb_re - 1.0
    num_im = lb_im
    g_re = (num_re * params["lam_re"] + num_im * params["lam_im"]) / denom
    g_im = (num_im * params["lam_re"] - num_re * params["lam_im"]) / denom
    # B_bar = diag((Lambda_bar - 1)/Lambda) @ B
    bbar_re = g_re.T * params["B_re"] - g_im.T * params["B_im"]   # (P, D)
    bbar_im = g_re.T * params["B_im"] + g_im.T * params["B_re"]
    return lb_re, lb_im, bbar_re, bbar_im


def _pack_layer(params, step_scale):
    """Fused / bf16 parameter packing shared by kernel wrapper and reference."""
    lb_re, lb_im, bbar_re, bbar_im = _discretize(params, step_scale)
    bbar_p = jnp.concatenate([bbar_re, bbar_im], axis=0).astype(jnp.bfloat16)     # (2P, D)
    c_p = jnp.concatenate([params["C_re"], -params["C_im"]], axis=1).astype(jnp.bfloat16)  # (D, 2P)
    return (lb_re, lb_im, bbar_p, c_p,
            params["Wenc"].astype(jnp.bfloat16),
            params["Wdec"].astype(jnp.bfloat16))


# ------------------------------ per-layer wrapper -------------------------------


def s5_block_forward(x, params, step_scale=1.0, seq_tile=8):
    bsz, seq_len, dim = x.shape
    assert seq_len % seq_tile == 0 and seq_tile % 8 == 0, (seq_len, seq_tile)
    state_dim = params["lam_re"].shape[-1]
    lb_re, lb_im, bbar_p, c_p, wenc, wdec = _pack_layer(params, step_scale)
    n_chunks = seq_len // seq_tile

    def xmap(b, c):      # activation / output blocks: (batch, seq-chunk)
        return (b, c, 0)

    def wmap(b, c):      # weights: constant block -> stays resident, no re-DMA
        return (0, 0)

    grid_spec = pltpu.PrefetchScalarGridSpec(
        num_scalar_prefetch=0,
        grid=(bsz, n_chunks),
        in_specs=[
            pl.BlockSpec((None, seq_tile, dim), xmap),        # x (batch squeezed)
            pl.BlockSpec((1, dim), wmap),                     # ln1_g
            pl.BlockSpec((1, dim), wmap),                     # ln1_b
            pl.BlockSpec((1, state_dim), wmap),               # Lambda_bar re
            pl.BlockSpec((1, state_dim), wmap),               # Lambda_bar im
            pl.BlockSpec((2 * state_dim, dim), wmap),         # B_bar packed (bf16)
            pl.BlockSpec((dim, 2 * state_dim), wmap),         # C packed     (bf16)
            pl.BlockSpec((1, dim), wmap),                     # D feedthrough
            pl.BlockSpec((1, dim), wmap),                     # ln2_g
            pl.BlockSpec((1, dim), wmap),                     # ln2_b
            pl.BlockSpec(wenc.shape, wmap),                   # ff_enc (bf16)
            pl.BlockSpec(wdec.shape, wmap),                   # ff_dec (bf16)
        ],
        out_specs=pl.BlockSpec((None, seq_tile, dim), xmap),
        scratch_shapes=[
            pltpu.VMEM((1, state_dim), jnp.float32),          # SSM state re carry
            pltpu.VMEM((1, state_dim), jnp.float32),          # SSM state im carry
        ],
    )

    return pl.pallas_call(
        s5_block_kernel,
        out_shape=jax.ShapeDtypeStruct((bsz, seq_len, dim), jnp.float32),
        grid_spec=grid_spec,
        compiler_params=pltpu.CompilerParams(
            dimension_semantics=("parallel", "arbitrary"),
            vmem_limit_bytes=32 * 1024 * 1024),
    )(
        x,
        params["ln1_g"], params["ln1_b"],
        lb_re, lb_im,
        bbar_p, c_p,
        params["D"],
        params["ln2_g"], params["ln2_b"],
        wenc, wdec,
    )


def multilayer_s5_forward(x, layer_params, step_scale=1.0, seq_tile=8):
    """MultilayerS5Block.forward (return_state=False): fold x through each layer."""
    for p in layer_params:
        x = s5_block_forward(x, p, step_scale, seq_tile=seq_tile)
    return x


# --------------------------- pure-JAX reference (check) --------------------------


def _s5_block_ref(x, params, step_scale=1.0):
    bsz, seq_len, dim = x.shape
    p = params["lam_re"].shape[-1]
    dff = params["Wdec"].shape[-1]
    lb_re, lb_im, bbar_p, c_p, wenc, wdec = _pack_layer(params, step_scale)

    fx = _layernorm(x, params["ln1_g"], params["ln1_b"])
    res = fx
    fx16 = fx.reshape(bsz * seq_len, dim).astype(jnp.bfloat16)
    bu = _matmul_nt(fx16, bbar_p).reshape(bsz, seq_len, 2 * p)

    st_re = jnp.zeros((bsz, p), jnp.float32)
    st_im = jnp.zeros((bsz, p), jnp.float32)
    xs_re_l, xs_im_l = [], []
    for t in range(seq_len):
        br = bu[:, t, :p]
        bi = bu[:, t, p:]
        nr = lb_re * st_re - lb_im * st_im + br
        ni = lb_re * st_im + lb_im * st_re + bi
        st_re, st_im = nr, ni
        xs_re_l.append(st_re)
        xs_im_l.append(st_im)
    xs = jnp.concatenate(
        [jnp.stack(xs_re_l, axis=1), jnp.stack(xs_im_l, axis=1)], axis=-1
    ).reshape(bsz * seq_len, 2 * p)

    y = 2.0 * _matmul_nt(xs.astype(jnp.bfloat16), c_p).reshape(bsz, seq_len, dim)
    y = y + fx * params["D"]
    x1 = _gelu(y) + res

    fx2 = _layernorm(x1, params["ln2_g"], params["ln2_b"])
    f2 = fx2.reshape(bsz * seq_len, dim).astype(jnp.bfloat16)
    hh = _matmul_nt(f2, wenc)
    h = hh[:, :dff] * _gelu(hh[:, dff:])
    o = _matmul_nt(h.astype(jnp.bfloat16), wdec).reshape(bsz, seq_len, dim)
    return o + fx2


def multilayer_s5_ref(x, layer_params, step_scale=1.0):
    for p in layer_params:
        x = _s5_block_ref(x, p, step_scale)
    return x


# ------------------------------ deterministic params -----------------------------


def init_layer_params(key, dim, state_dim, ff_dim):
    ks = jax.random.split(key, 10)
    return {
        "ln1_g": jnp.ones((1, dim), jnp.float32),
        "ln1_b": jnp.zeros((1, dim), jnp.float32),
        # stable complex eigenvalues (Re < 0)
        "lam_re": -(0.5 + jax.random.uniform(ks[0], (1, state_dim), jnp.float32)),
        "lam_im": math.pi * jax.random.normal(ks[1], (1, state_dim), jnp.float32),
        "log_step": jax.random.uniform(
            ks[2], (1, state_dim), jnp.float32,
            minval=math.log(1e-3), maxval=math.log(1e-1)),
        "B_re": jax.random.normal(ks[3], (state_dim, dim), jnp.float32) / math.sqrt(dim),
        "B_im": jax.random.normal(ks[4], (state_dim, dim), jnp.float32) / math.sqrt(dim),
        "C_re": jax.random.normal(ks[5], (dim, state_dim), jnp.float32) / math.sqrt(state_dim),
        "C_im": jax.random.normal(ks[6], (dim, state_dim), jnp.float32) / math.sqrt(state_dim),
        "D": jax.random.normal(ks[7], (1, dim), jnp.float32),
        "ln2_g": jnp.ones((1, dim), jnp.float32),
        "ln2_b": jnp.zeros((1, dim), jnp.float32),
        # single ff_enc weight (2*Dff, D), GEGLU halves split from the output
        "Wenc": jax.random.normal(ks[8], (2 * ff_dim, dim), jnp.float32) / math.sqrt(dim),
        "Wdec": jax.random.normal(ks[9], (dim, ff_dim), jnp.float32) / math.sqrt(ff_dim),
    }


# --------------------------------------- main -----------------------------------

if __name__ == "__main__":
    key = jax.random.PRNGKey(0)
    # batch, seq, model dim, SSM state dim (state_hidden=128 like the module), ff dim
    B, L, D, P, DFF = 2, 32, 32, 128, 32
    SEQ_TILE = 8
    kx, k1, k2 = jax.random.split(key, 3)
    x = jax.random.normal(kx, (B, L, D), jnp.float32)
    layers = [init_layer_params(k, D, P, DFF) for k in (k1, k2)]

    fwd = jax.jit(multilayer_s5_forward, static_argnames=("seq_tile",))
    out = jax.block_until_ready(fwd(x, layers, 1.0, seq_tile=SEQ_TILE))

    ref = jax.block_until_ready(multilayer_s5_ref(x, layers, 1.0))
    err = float(jnp.max(jnp.abs(out - ref)))
    assert out.shape == (B, L, D), out.shape
    assert err < 2e-2, f"max abs err vs reference: {err}"
    print("KERNEL_OK")
</pallas_src>

<mosaic_0001>
module attributes {stable_mosaic.version = 11 : i64} {
  func.func @s5_block_kernel(%arg0: i32, %arg1: i32, %arg2: memref<1x8x32xf32, #tpu.memory_space<vmem>>, %arg3: memref<1x32xf32, #tpu.memory_space<vmem>>, %arg4: memref<1x32xf32, #tpu.memory_space<vmem>>, %arg5: memref<1x128xf32, #tpu.memory_space<vmem>>, %arg6: memref<1x128xf32, #tpu.memory_space<vmem>>, %arg7: memref<256x32xbf16, #tpu.memory_space<vmem>>, %arg8: memref<32x256xbf16, #tpu.memory_space<vmem>>, %arg9: memref<1x32xf32, #tpu.memory_space<vmem>>, %arg10: memref<1x32xf32, #tpu.memory_space<vmem>>, %arg11: memref<1x32xf32, #tpu.memory_space<vmem>>, %arg12: memref<64x32xbf16, #tpu.memory_space<vmem>>, %arg13: memref<32x32xbf16, #tpu.memory_space<vmem>>, %arg14: memref<1x8x32xf32, #tpu.memory_space<vmem>>, %arg15: memref<1x128xf32, #tpu.memory_space<vmem>>, %arg16: memref<1x128xf32, #tpu.memory_space<vmem>>) attributes {dimension_semantics = [#tpu.dimension_semantics<parallel>, #tpu.dimension_semantics<arbitrary>], iteration_bounds = array<i64: 2, 4>, scalar_prefetch = 0 : i64, scratch_operands = 2 : i64, tpu.core_type = #tpu.core_type<tc>, window_params = [{transform_indices = @transform_0, window_bounds = array<i64: 1, 8, 32>}, {pipeline_mode = #tpu.pipeline_mode<synchronous>, transform_indices = @transform_1, window_bounds = array<i64: 1, 32>}, {pipeline_mode = #tpu.pipeline_mode<synchronous>, transform_indices = @transform_2, window_bounds = array<i64: 1, 32>}, {pipeline_mode = #tpu.pipeline_mode<synchronous>, transform_indices = @transform_3, window_bounds = array<i64: 1, 128>}, {pipeline_mode = #tpu.pipeline_mode<synchronous>, transform_indices = @transform_4, window_bounds = array<i64: 1, 128>}, {pipeline_mode = #tpu.pipeline_mode<synchronous>, transform_indices = @transform_5, window_bounds = array<i64: 256, 32>}, {pipeline_mode = #tpu.pipeline_mode<synchronous>, transform_indices = @transform_6, window_bounds = array<i64: 32, 256>}, {pipeline_mode = #tpu.pipeline_mode<synchronous>, transform_indices = @transform_7, window_bounds = array<i64: 1, 32>}, {pipeline_mode = #tpu.pipeline_mode<synchronous>, transform_indices = @transform_8, window_bounds = array<i64: 1, 32>}, {pipeline_mode = #tpu.pipeline_mode<synchronous>, transform_indices = @transform_9, window_bounds = array<i64: 1, 32>}, {pipeline_mode = #tpu.pipeline_mode<synchronous>, transform_indices = @transform_10, window_bounds = array<i64: 64, 32>}, {pipeline_mode = #tpu.pipeline_mode<synchronous>, transform_indices = @transform_11, window_bounds = array<i64: 32, 32>}, {transform_indices = @transform_12, window_bounds = array<i64: 1, 8, 32>}]} {
    %c0_i32 = arith.constant 0 : i32
    %0 = arith.cmpi eq, %arg1, %c0_i32 : i32
    %1 = arith.extui %0 : i1 to i32
    %c0_i32_0 = arith.constant 0 : i32
    %2 = arith.cmpi ne, %1, %c0_i32_0 : i32
    scf.if %2 {
      %cst_80 = arith.constant 0.000000e+00 : f32
      %254 = vector.broadcast %cst_80 : f32 to vector<1x128xf32>
      %c0_81 = arith.constant 0 : index
      %c0_82 = arith.constant 0 : index
      %255 = vector.load %arg15[%c0_81, %c0_82] : memref<1x128xf32, #tpu.memory_space<vmem>>, vector<1x128xf32>
      tpu.vector_store %arg15[%c0_81, %c0_82], %254 {strides = array<i32>} : memref<1x128xf32, #tpu.memory_space<vmem>>, vector<1x128xf32>,
      %cst_83 = arith.constant 0.000000e+00 : f32
      %256 = vector.broadcast %cst_83 : f32 to vector<1x128xf32>
      %c0_84 = arith.constant 0 : index
      %c0_85 = arith.constant 0 : index
      %257 = vector.load %arg16[%c0_84, %c0_85] : memref<1x128xf32, #tpu.memory_space<vmem>>, vector<1x128xf32>
      tpu.vector_store %arg16[%c0_84, %c0_85], %256 {strides = array<i32>} : memref<1x128xf32, #tpu.memory_space<vmem>>, vector<1x128xf32>,
    } else {
    }
    %c0 = arith.constant 0 : index
    %c0_1 = arith.constant 0 : index
    %c0_2 = arith.constant 0 : index
    %3 = vector.load %arg2[%c0, %c0_1, %c0_2] : memref<1x8x32xf32, #tpu.memory_space<vmem>>, vector<1x8x32xf32>
    %4 = vector.shape_cast %3 : vector<1x8x32xf32> to vector<8x32xf32>
    %c0_3 = arith.constant 0 : index
    %c0_4 = arith.constant 0 : index
    %5 = vector.load %arg3[%c0_3, %c0_4] : memref<1x32xf32, #tpu.memory_space<vmem>>, vector<1x32xf32>
    %c0_5 = arith.constant 0 : index
    %c0_6 = arith.constant 0 : index
    %6 = vector.load %arg4[%c0_5, %c0_6] : memref<1x32xf32, #tpu.memory_space<vmem>>, vector<1x32xf32>
    %cst = arith.constant dense<0.000000e+00> : vector<8xf32>
    %7 = vector.multi_reduction <add>, %4, %cst [1] : vector<8x32xf32> to vector<8xf32>
    %8 = vector.shape_cast %7 : vector<8xf32> to vector<8x1xf32>
    %cst_7 = arith.constant 3.200000e+01 : f32
    %9 = vector.broadcast %cst_7 : f32 to vector<8x1xf32>
    %10 = arith.divf %8, %9 : vector<8x1xf32>
    %11 = vector.broadcast %10 : vector<8x1xf32> to vector<8x32xf32>
    %12 = arith.subf %4, %11 : vector<8x32xf32>
    %13 = vector.broadcast %10 : vector<8x1xf32> to vector<8x32xf32>
    %14 = arith.subf %4, %13 : vector<8x32xf32>
    %15 = arith.mulf %12, %14 : vector<8x32xf32>
    %cst_8 = arith.constant dense<0.000000e+00> : vector<8xf32>
    %16 = vector.multi_reduction <add>, %15, %cst_8 [1] : vector<8x32xf32> to vector<8xf32>
    %17 = vector.shape_cast %16 : vector<8xf32> to vector<8x1xf32>
    %cst_9 = arith.constant 3.200000e+01 : f32
    %18 = vector.broadcast %cst_9 : f32 to vector<8x1xf32>
    %19 = arith.divf %17, %18 : vector<8x1xf32>
    %20 = vector.broadcast %10 : vector<8x1xf32> to vector<8x32xf32>
    %21 = arith.subf %4, %20 : vector<8x32xf32>
    %cst_10 = arith.constant 9.99999974E-6 : f32
    %22 = vector.broadcast %cst_10 : f32 to vector<8x1xf32>
    %23 = arith.addf %19, %22 : vector<8x1xf32>
    %24 = math.rsqrt %23 : vector<8x1xf32>
    %25 = vector.broadcast %24 : vector<8x1xf32> to vector<8x32xf32>
    %26 = arith.mulf %21, %25 : vector<8x32xf32>
    %27 = vector.broadcast %5 : vector<1x32xf32> to vector<8x32xf32>
    %28 = arith.mulf %26, %27 : vector<8x32xf32>
    %29 = vector.broadcast %6 : vector<1x32xf32> to vector<8x32xf32>
    %30 = arith.addf %28, %29 : vector<8x32xf32>
    %31 = arith.truncf %30 : vector<8x32xf32> to vector<8x32xbf16>
    %c0_11 = arith.constant 0 : index
    %c0_12 = arith.constant 0 : index
    %32 = vector.load %arg7[%c0_11, %c0_12] : memref<256x32xbf16, #tpu.memory_space<vmem>>, vector<256x32xbf16>
    %cst_13 = arith.constant dense<0.000000e+00> : vector<8x256xf32>
    %33 = tpu.matmul %31, %32, %cst_13 {dimension_numbers = #tpu.dot_dimension_numbers<[1], [1], [0], [0], [0, 0, 1, 0], [], []>} : vector<8x32xbf16>, vector<256x32xbf16>, vector<8x256xf32> -> vector<8x256xf32>
    %34 = vector.extract_strided_slice %33 {offsets = [0, 0], sizes = [8, 128], strides = [1, 1]} : vector<8x256xf32> to vector<8x128xf32>
    %35 = vector.extract_strided_slice %33 {offsets = [0, 128], sizes = [8, 128], strides = [1, 1]} : vector<8x256xf32> to vector<8x128xf32>
    %c0_14 = arith.constant 0 : index
    %c0_15 = arith.constant 0 : index
    %36 = vector.load %arg5[%c0_14, %c0_15] : memref<1x128xf32, #tpu.memory_space<vmem>>, vector<1x128xf32>
    %c0_16 = arith.constant 0 : index
    %c0_17 = arith.constant 0 : index
    %37 = vector.load %arg6[%c0_16, %c0_17] : memref<1x128xf32, #tpu.memory_space<vmem>>, vector<1x128xf32>
    %c0_18 = arith.constant 0 : index
    %c0_19 = arith.constant 0 : index
    %38 = vector.load %arg15[%c0_18, %c0_19] : memref<1x128xf32, #tpu.memory_space<vmem>>, vector<1x128xf32>
    %c0_20 = arith.constant 0 : index
    %c0_21 = arith.constant 0 : index
    %39 = vector.load %arg16[%c0_20, %c0_21] : memref<1x128xf32, #tpu.memory_space<vmem>>, vector<1x128xf32>
    %40 = vector.extract_strided_slice %34 {offsets = [0, 0], sizes = [1, 128], strides = [1, 1]} : vector<8x128xf32> to vector<1x128xf32>
    %41 = vector.extract_strided_slice %35 {offsets = [0, 0], sizes = [1, 128], strides = [1, 1]} : vector<8x128xf32> to vector<1x128xf32>
    %42 = arith.mulf %36, %38 : vector<1x128xf32>
    %43 = arith.mulf %37, %39 : vector<1x128xf32>
    %44 = arith.subf %42, %43 : vector<1x128xf32>
    %45 = arith.addf %44, %40 : vector<1x128xf32>
    %46 = arith.mulf %36, %39 : vector<1x128xf32>
    %47 = arith.mulf %37, %38 : vector<1x128xf32>
    %48 = arith.addf %46, %47 : vector<1x128xf32>
    %49 = arith.addf %48, %41 : vector<1x128xf32>
    %50 = vector.extract_strided_slice %34 {offsets = [1, 0], sizes = [1, 128], strides = [1, 1]} : vector<8x128xf32> to vector<1x128xf32>
    %51 = vector.extract_strided_slice %35 {offsets = [1, 0], sizes = [1, 128], strides = [1, 1]} : vector<8x128xf32> to vector<1x128xf32>
    %52 = arith.mulf %36, %45 : vector<1x128xf32>
    %53 = arith.mulf %37, %49 : vector<1x128xf32>
    %54 = arith.subf %52, %53 : vector<1x128xf32>
    %55 = arith.addf %54, %50 : vector<1x128xf32>
    %56 = arith.mulf %36, %49 : vector<1x128xf32>
    %57 = arith.mulf %37, %45 : vector<1x128xf32>
    %58 = arith.addf %56, %57 : vector<1x128xf32>
    %59 = arith.addf %58, %51 : vector<1x128xf32>
    %60 = vector.extract_strided_slice %34 {offsets = [2, 0], sizes = [1, 128], strides = [1, 1]} : vector<8x128xf32> to vector<1x128xf32>
    %61 = vector.extract_strided_slice %35 {offsets = [2, 0], sizes = [1, 128], strides = [1, 1]} : vector<8x128xf32> to vector<1x128xf32>
    %62 = arith.mulf %36, %55 : vector<1x128xf32>
    %63 = arith.mulf %37, %59 : vector<1x128xf32>
    %64 = arith.subf %62, %63 : vector<1x128xf32>
    %65 = arith.addf %64, %60 : vector<1x128xf32>
    %66 = arith.mulf %36, %59 : vector<1x128xf32>
    %67 = arith.mulf %37, %55 : vector<1x128xf32>
    %68 = arith.addf %66, %67 : vector<1x128xf32>
    %69 = arith.addf %68, %61 : vector<1x128xf32>
    %70 = vector.extract_strided_slice %34 {offsets = [3, 0], sizes = [1, 128], strides = [1, 1]} : vector<8x128xf32> to vector<1x128xf32>
    %71 = vector.extract_strided_slice %35 {offsets = [3, 0], sizes = [1, 128], strides = [1, 1]} : vector<8x128xf32> to vector<1x128xf32>
    %72 = arith.mulf %36, %65 : vector<1x128xf32>
    %73 = arith.mulf %37, %69 : vector<1x128xf32>
    %74 = arith.subf %72, %73 : vector<1x128xf32>
    %75 = arith.addf %74, %70 : vector<1x128xf32>
    %76 = arith.mulf %36, %69 : vector<1x128xf32>
    %77 = arith.mulf %37, %65 : vector<1x128xf32>
    %78 = arith.addf %76, %77 : vector<1x128xf32>
    %79 = arith.addf %78, %71 : vector<1x128xf32>
    %80 = vector.extract_strided_slice %34 {offsets = [4, 0], sizes = [1, 128], strides = [1, 1]} : vector<8x128xf32> to vector<1x128xf32>
    %81 = vector.extract_strided_slice %35 {offsets = [4, 0], sizes = [1, 128], strides = [1, 1]} : vector<8x128xf32> to vector<1x128xf32>
    %82 = arith.mulf %36, %75 : vector<1x128xf32>
    %83 = arith.mulf %37, %79 : vector<1x128xf32>
    %84 = arith.subf %82, %83 : vector<1x128xf32>
    %85 = arith.addf %84, %80 : vector<1x128xf32>
    %86 = arith.mulf %36, %79 : vector<1x128xf32>
    %87 = arith.mulf %37, %75 : vector<1x128xf32>
    %88 = arith.addf %86, %87 : vector<1x128xf32>
    %89 = arith.addf %88, %81 : vector<1x128xf32>
    %90 = vector.extract_strided_slice %34 {offsets = [5, 0], sizes = [1, 128], strides = [1, 1]} : vector<8x128xf32> to vector<1x128xf32>
    %91 = vector.extract_strided_slice %35 {offsets = [5, 0], sizes = [1, 128], strides = [1, 1]} : vector<8x128xf32> to vector<1x128xf32>
    %92 = arith.mulf %36, %85 : vector<1x128xf32>
    %93 = arith.mulf %37, %89 : vector<1x128xf32>
    %94 = arith.subf %92, %93 : vector<1x128xf32>
    %95 = arith.addf %94, %90 : vector<1x128xf32>
    %96 = arith.mulf %36, %89 : vector<1x128xf32>
    %97 = arith.mulf %37, %85 : vector<1x128xf32>
    %98 = arith.addf %96, %97 : vector<1x128xf32>
    %99 = arith.addf %98, %91 : vector<1x128xf32>
    %100 = vector.extract_strided_slice %34 {offsets = [6, 0], sizes = [1, 128], strides = [1, 1]} : vector<8x128xf32> to vector<1x128xf32>
    %101 = vector.extract_strided_slice %35 {offsets = [6, 0], sizes = [1, 128], strides = [1, 1]} : vector<8x128xf32> to vector<1x128xf32>
    %102 = arith.mulf %36, %95 : vector<1x128xf32>
    %103 = arith.mulf %37, %99 : vector<1x128xf32>
    %104 = arith.subf %102, %103 : vector<1x128xf32>
    %105 = arith.addf %104, %100 : vector<1x128xf32>
    %106 = arith.mulf %36, %99 : vector<1x128xf32>
    %107 = arith.mulf %37, %95 : vector<1x128xf32>
    %108 = arith.addf %106, %107 : vector<1x128xf32>
    %109 = arith.addf %108, %101 : vector<1x128xf32>
    %110 = vector.extract_strided_slice %34 {offsets = [7, 0], sizes = [1, 128], strides = [1, 1]} : vector<8x128xf32> to vector<1x128xf32>
    %111 = vector.extract_strided_slice %35 {offsets = [7, 0], sizes = [1, 128], strides = [1, 1]} : vector<8x128xf32> to vector<1x128xf32>
    %112 = arith.mulf %36, %105 : vector<1x128xf32>
    %113 = arith.mulf %37, %109 : vector<1x128xf32>
    %114 = arith.subf %112, %113 : vector<1x128xf32>
    %115 = arith.addf %114, %110 : vector<1x128xf32>
    %116 = arith.mulf %36, %109 : vector<1x128xf32>
    %117 = arith.mulf %37, %105 : vector<1x128xf32>
    %118 = arith.addf %116, %117 : vector<1x128xf32>
    %119 = arith.addf %118, %111 : vector<1x128xf32>
    %c0_22 = arith.constant 0 : index
    %c0_23 = arith.constant 0 : index
    %120 = vector.load %arg15[%c0_22, %c0_23] : memref<1x128xf32, #tpu.memory_space<vmem>>, vector<1x128xf32>
    tpu.vector_store %arg15[%c0_22, %c0_23], %115 {strides = array<i32>} : memref<1x128xf32, #tpu.memory_space<vmem>>, vector<1x128xf32>,
    %c0_24 = arith.constant 0 : index
    %c0_25 = arith.constant 0 : index
    %121 = vector.load %arg16[%c0_24, %c0_25] : memref<1x128xf32, #tpu.memory_space<vmem>>, vector<1x128xf32>
    tpu.vector_store %arg16[%c0_24, %c0_25], %119 {strides = array<i32>} : memref<1x128xf32, #tpu.memory_space<vmem>>, vector<1x128xf32>,
    %122 = tpu.concatenate %45, %55, %65, %75, %85, %95, %105, %115 in 0 : vector<1x128xf32>, vector<1x128xf32>, vector<1x128xf32>, vector<1x128xf32>, vector<1x128xf32>, vector<1x128xf32>, vector<1x128xf32>, vector<1x128xf32> -> vector<8x128xf32>
    %123 = tpu.concatenate %49, %59, %69, %79, %89, %99, %109, %119 in 0 : vector<1x128xf32>, vector<1x128xf32>, vector<1x128xf32>, vector<1x128xf32>, vector<1x128xf32>, vector<1x128xf32>, vector<1x128xf32>, vector<1x128xf32> -> vector<8x128xf32>
    %124 = tpu.concatenate %122, %123 in 1 : vector<8x128xf32>, vector<8x128xf32> -> vector<8x256xf32>
    %125 = arith.truncf %124 : vector<8x256xf32> to vector<8x256xbf16>
    %c0_26 = arith.constant 0 : index
    %c0_27 = arith.constant 0 : index
    %126 = vector.load %arg8[%c0_26, %c0_27] : memref<32x256xbf16, #tpu.memory_space<vmem>>, vector<32x256xbf16>
    %cst_28 = arith.constant dense<0.000000e+00> : vector<8x32xf32>
    %127 = tpu.matmul %125, %126, %cst_28 {dimension_numbers = #tpu.dot_dimension_numbers<[1], [1], [0], [0], [0, 0, 1, 0], [], []>} : vector<8x256xbf16>, vector<32x256xbf16>, vector<8x32xf32> -> vector<8x32xf32>
    %cst_29 = arith.constant 2.000000e+00 : f32
    %128 = vector.broadcast %cst_29 : f32 to vector<8x32xf32>
    %129 = arith.mulf %128, %127 : vector<8x32xf32>
    %c0_30 = arith.constant 0 : index
    %c0_31 = arith.constant 0 : index
    %130 = vector.load %arg9[%c0_30, %c0_31] : memref<1x32xf32, #tpu.memory_space<vmem>>, vector<1x32xf32>
    %131 = vector.broadcast %130 : vector<1x32xf32> to vector<8x32xf32>
    %132 = arith.mulf %30, %131 : vector<8x32xf32>
    %133 = arith.addf %129, %132 : vector<8x32xf32>
    %cst_32 = arith.constant 5.000000e-01 : f32
    %134 = vector.broadcast %cst_32 : f32 to vector<8x32xf32>
    %135 = arith.mulf %134, %133 : vector<8x32xf32>
    %cst_33 = arith.constant 0.707106769 : f32
    %136 = vector.broadcast %cst_33 : f32 to vector<8x32xf32>
    %137 = arith.mulf %133, %136 : vector<8x32xf32>
    %cst_34 = arith.constant 0.000000e+00 : f32
    %138 = vector.broadcast %cst_34 : f32 to vector<8x32xf32>
    %139 = arith.cmpf oge, %137, %138 : vector<8x32xf32>
    %cst_35 = arith.constant 1.000000e+00 : f32
    %cst_36 = arith.constant -1.000000e+00 : f32
    %140 = vector.broadcast %cst_35 : f32 to vector<8x32xf32>
    %141 = vector.broadcast %cst_36 : f32 to vector<8x32xf32>
    %142 = arith.select %139, %140, %141 : vector<8x32xi1>, vector<8x32xf32>
    %143 = math.absf %137 : vector<8x32xf32>
    %cst_37 = arith.constant 0.327591091 : f32
    %144 = vector.broadcast %cst_37 : f32 to vector<8x32xf32>
    %145 = arith.mulf %144, %143 : vector<8x32xf32>
    %cst_38 = arith.constant 1.000000e+00 : f32
    %146 = vector.broadcast %cst_38 : f32 to vector<8x32xf32>
    %147 = arith.addf %146, %145 : vector<8x32xf32>
    %148 = tpu.reciprocal %147 {approx = true} : vector<8x32xf32> -> vector<8x32xf32>
    %cst_39 = arith.constant 1.06140542 : f32
    %149 = vector.broadcast %cst_39 : f32 to vector<8x32xf32>
    %150 = arith.mulf %148, %149 : vector<8x32xf32>
    %cst_40 = arith.constant -1.45315206 : f32
    %151 = vector.broadcast %cst_40 : f32 to vector<8x32xf32>
    %152 = arith.addf %151, %150 : vector<8x32xf32>
    %153 = arith.mulf %148, %152 : vector<8x32xf32>
    %cst_41 = arith.constant 1.42141378 : f32
    %154 = vector.broadcast %cst_41 : f32 to vector<8x32xf32>
    %155 = arith.addf %154, %153 : vector<8x32xf32>
    %156 = arith.mulf %148, %155 : vector<8x32xf32>
    %cst_42 = arith.constant -0.284496725 : f32
    %157 = vector.broadcast %cst_42 : f32 to vector<8x32xf32>
    %158 = arith.addf %157, %156 : vector<8x32xf32>
    %159 = arith.mulf %148, %158 : vector<8x32xf32>
    %cst_43 = arith.constant 0.254829586 : f32
    %160 = vector.broadcast %cst_43 : f32 to vector<8x32xf32>
    %161 = arith.addf %160, %159 : vector<8x32xf32>
    %162 = arith.mulf %148, %161 : vector<8x32xf32>
    %cst_44 = arith.constant 0.000000e+00 : f32
    %163 = vector.broadcast %cst_44 : f32 to vector<8x32xf32>
    %164 = arith.subf %163, %143 : vector<8x32xf32>
    %165 = arith.mulf %164, %143 : vector<8x32xf32>
    %166 = math.exp %165 : vector<8x32xf32>
    %167 = arith.mulf %162, %166 : vector<8x32xf32>
    %cst_45 = arith.constant 1.000000e+00 : f32
    %168 = vector.broadcast %cst_45 : f32 to vector<8x32xf32>
    %169 = arith.subf %168, %167 : vector<8x32xf32>
    %170 = arith.mulf %142, %169 : vector<8x32xf32>
    %cst_46 = arith.constant 1.000000e+00 : f32
    %171 = vector.broadcast %cst_46 : f32 to vector<8x32xf32>
    %172 = arith.addf %171, %170 : vector<8x32xf32>
    %173 = arith.mulf %135, %172 : vector<8x32xf32>
    %174 = arith.addf %173, %30 : vector<8x32xf32>
    %c0_47 = arith.constant 0 : index
    %c0_48 = arith.constant 0 : index
    %175 = vector.load %arg10[%c0_47, %c0_48] : memref<1x32xf32, #tpu.memory_space<vmem>>, vector<1x32xf32>
    %c0_49 = arith.constant 0 : index
    %c0_50 = arith.constant 0 : index
    %176 = vector.load %arg11[%c0_49, %c0_50] : memref<1x32xf32, #tpu.memory_space<vmem>>, vector<1x32xf32>
    %cst_51 = arith.constant dense<0.000000e+00> : vector<8xf32>
    %177 = vector.multi_reduction <add>, %174, %cst_51 [1] : vector<8x32xf32> to vector<8xf32>
    %178 = vector.shape_cast %177 : vector<8xf32> to vector<8x1xf32>
    %cst_52 = arith.constant 3.200000e+01 : f32
    %179 = vector.broadcast %cst_52 : f32 to vector<8x1xf32>
    %180 = arith.divf %178, %179 : vector<8x1xf32>
    %181 = vector.broadcast %180 : vector<8x1xf32> to vector<8x32xf32>
    %182 = arith.subf %174, %181 : vector<8x32xf32>
    %183 = vector.broadcast %180 : vector<8x1xf32> to vector<8x32xf32>
    %184 = arith.subf %174, %183 : vector<8x32xf32>
    %185 = arith.mulf %182, %184 : vector<8x32xf32>
    %cst_53 = arith.constant dense<0.000000e+00> : vector<8xf32>
    %186 = vector.multi_reduction <add>, %185, %cst_53 [1] : vector<8x32xf32> to vector<8xf32>
    %187 = vector.shape_cast %186 : vector<8xf32> to vector<8x1xf32>
    %cst_54 = arith.constant 3.200000e+01 : f32
    %188 = vector.broadcast %cst_54 : f32 to vector<8x1xf32>
    %189 = arith.divf %187, %188 : vector<8x1xf32>
    %190 = vector.broadcast %180 : vector<8x1xf32> to vector<8x32xf32>
    %191 = arith.subf %174, %190 : vector<8x32xf32>
    %cst_55 = arith.constant 9.99999974E-6 : f32
    %192 = vector.broadcast %cst_55 : f32 to vector<8x1xf32>
    %193 = arith.addf %189, %192 : vector<8x1xf32>
    %194 = math.rsqrt %193 : vector<8x1xf32>
    %195 = vector.broadcast %194 : vector<8x1xf32> to vector<8x32xf32>
    %196 = arith.mulf %191, %195 : vector<8x32xf32>
    %197 = vector.broadcast %175 : vector<1x32xf32> to vector<8x32xf32>
    %198 = arith.mulf %196, %197 : vector<8x32xf32>
    %199 = vector.broadcast %176 : vector<1x32xf32> to vector<8x32xf32>
    %200 = arith.addf %198, %199 : vector<8x32xf32>
    %201 = arith.truncf %200 : vector<8x32xf32> to vector<8x32xbf16>
    %c0_56 = arith.constant 0 : index
    %c0_57 = arith.constant 0 : index
    %202 = vector.load %arg12[%c0_56, %c0_57] : memref<64x32xbf16, #tpu.memory_space<vmem>>, vector<64x32xbf16>
    %cst_58 = arith.constant dense<0.000000e+00> : vector<8x64xf32>
    %203 = tpu.matmul %201, %202, %cst_58 {dimension_numbers = #tpu.dot_dimension_numbers<[1], [1], [0], [0], [0, 0, 1, 0], [], []>} : vector<8x32xbf16>, vector<64x32xbf16>, vector<8x64xf32> -> vector<8x64xf32>
    %204 = vector.extract_strided_slice %203 {offsets = [0, 0], sizes = [8, 32], strides = [1, 1]} : vector<8x64xf32> to vector<8x32xf32>
    %205 = vector.extract_strided_slice %203 {offsets = [0, 32], sizes = [8, 32], strides = [1, 1]} : vector<8x64xf32> to vector<8x32xf32>
    %cst_59 = arith.constant 5.000000e-01 : f32
    %206 = vector.broadcast %cst_59 : f32 to vector<8x32xf32>
    %207 = arith.mulf %206, %205 : vector<8x32xf32>
    %cst_60 = arith.constant 0.707106769 : f32
    %208 = vector.broadcast %cst_60 : f32 to vector<8x32xf32>
    %209 = arith.mulf %205, %208 : vector<8x32xf32>
    %cst_61 = arith.constant 0.000000e+00 : f32
    %210 = vector.broadcast %cst_61 : f32 to vector<8x32xf32>
    %211 = arith.cmpf oge, %209, %210 : vector<8x32xf32>
    %cst_62 = arith.constant 1.000000e+00 : f32
    %cst_63 = arith.constant -1.000000e+00 : f32
    %212 = vector.broadcast %cst_62 : f32 to vector<8x32xf32>
    %213 = vector.broadcast %cst_63 : f32 to vector<8x32xf32>
    %214 = arith.select %211, %212, %213 : vector<8x32xi1>, vector<8x32xf32>
    %215 = math.absf %209 : vector<8x32xf32>
    %cst_64 = arith.constant 0.327591091 : f32
    %216 = vector.broadcast %cst_64 : f32 to vector<8x32xf32>
    %217 = arith.mulf %216, %215 : vector<8x32xf32>
    %cst_65 = arith.constant 1.000000e+00 : f32
    %218 = vector.broadcast %cst_65 : f32 to vector<8x32xf32>
    %219 = arith.addf %218, %217 : vector<8x32xf32>
    %220 = tpu.reciprocal %219 {approx = true} : vector<8x32xf32> -> vector<8x32xf32>
    %cst_66 = arith.constant 1.06140542 : f32
    %221 = vector.broadcast %cst_66 : f32 to vector<8x32xf32>
    %222 = arith.mulf %220, %221 : vector<8x32xf32>
    %cst_67 = arith.constant -1.45315206 : f32
    %223 = vector.broadcast %cst_67 : f32 to vector<8x32xf32>
    %224 = arith.addf %223, %222 : vector<8x32xf32>
    %225 = arith.mulf %220, %224 : vector<8x32xf32>
    %cst_68 = arith.constant 1.42141378 : f32
    %226 = vector.broadcast %cst_68 : f32 to vector<8x32xf32>
    %227 = arith.addf %226, %225 : vector<8x32xf32>
    %228 = arith.mulf %220, %227 : vector<8x32xf32>
    %cst_69 = arith.constant -0.284496725 : f32
    %229 = vector.broadcast %cst_69 : f32 to vector<8x32xf32>
    %230 = arith.addf %229, %228 : vector<8x32xf32>
    %231 = arith.mulf %220, %230 : vector<8x32xf32>
    %cst_70 = arith.constant 0.254829586 : f32
    %232 = vector.broadcast %cst_70 : f32 to vector<8x32xf32>
    %233 = arith.addf %232, %231 : vector<8x32xf32>
    %234 = arith.mulf %220, %233 : vector<8x32xf32>
    %cst_71 = arith.constant 0.000000e+00 : f32
    %235 = vector.broadcast %cst_71 : f32 to vector<8x32xf32>
    %236 = arith.subf %235, %215 : vector<8x32xf32>
    %237 = arith.mulf %236, %215 : vector<8x32xf32>
    %238 = math.exp %237 : vector<8x32xf32>
    %239 = arith.mulf %234, %238 : vector<8x32xf32>
    %cst_72 = arith.constant 1.000000e+00 : f32
    %240 = vector.broadcast %cst_72 : f32 to vector<8x32xf32>
    %241 = arith.subf %240, %239 : vector<8x32xf32>
    %242 = arith.mulf %214, %241 : vector<8x32xf32>
    %cst_73 = arith.constant 1.000000e+00 : f32
    %243 = vector.broadcast %cst_73 : f32 to vector<8x32xf32>
    %244 = arith.addf %243, %242 : vector<8x32xf32>
    %245 = arith.mulf %207, %244 : vector<8x32xf32>
    %246 = arith.mulf %204, %245 : vector<8x32xf32>
    %247 = arith.truncf %246 : vector<8x32xf32> to vector<8x32xbf16>
    %c0_74 = arith.constant 0 : index
    %c0_75 = arith.constant 0 : index
    %248 = vector.load %arg13[%c0_74, %c0_75] : memref<32x32xbf16, #tpu.memory_space<vmem>>, vector<32x32xbf16>
    %cst_76 = arith.constant dense<0.000000e+00> : vector<8x32xf32>
    %249 = tpu.matmul %247, %248, %cst_76 {dimension_numbers = #tpu.dot_dimension_numbers<[1], [1], [0], [0], [0, 0, 1, 0], [], []>} : vector<8x32xbf16>, vector<32x32xbf16>, vector<8x32xf32> -> vector<8x32xf32>
    %250 = arith.addf %249, %200 : vector<8x32xf32>
    %c0_77 = arith.constant 0 : index
    %c0_78 = arith.constant 0 : index
    %c0_79 = arith.constant 0 : index
    %251 = vector.load %arg14[%c0_77, %c0_78, %c0_79] : memref<1x8x32xf32, #tpu.memory_space<vmem>>, vector<1x8x32xf32>
    %252 = vector.shape_cast %251 : vector<1x8x32xf32> to vector<8x32xf32>
    %253 = vector.shape_cast %250 : vector<8x32xf32> to vector<1x8x32xf32>
    tpu.vector_store %arg14[%c0_77, %c0_78, %c0_79], %253 {strides = array<i32>} : memref<1x8x32xf32, #tpu.memory_space<vmem>>, vector<1x8x32xf32>,
    return
  }
  func.func @transform_0(%arg0: i32, %arg1: i32) -> (i32, i32, i32) {
    %c0_i32 = arith.constant 0 : i32
    %c0_i32_0 = arith.constant 0 : i32
    return %arg0, %arg1, %c0_i32 : i32, i32, i32
  }
  func.func @transform_1(%arg0: i32, %arg1: i32) -> (i32, i32) {
    %c0_i32 = arith.constant 0 : i32
    %c0_i32_0 = arith.constant 0 : i32
    %c0_i32_1 = arith.constant 0 : i32
    return %c0_i32, %c0_i32_0 : i32, i32
  }
  func.func @transform_2(%arg0: i32, %arg1: i32) -> (i32, i32) {
    %c0_i32 = arith.constant 0 : i32
    %c0_i32_0 = arith.constant 0 : i32
    %c0_i32_1 = arith.constant 0 : i32
    return %c0_i32, %c0_i32_0 : i32, i32
  }
  func.func @transform_3(%arg0: i32, %arg1: i32) -> (i32, i32) {
    %c0_i32 = arith.constant 0 : i32
    %c0_i32_0 = arith.constant 0 : i32
    %c0_i32_1 = arith.constant 0 : i32
    return %c0_i32, %c0_i32_0 : i32, i32
  }
  func.func @transform_4(%arg0: i32, %arg1: i32) -> (i32, i32) {
    %c0_i32 = arith.constant 0 : i32
    %c0_i32_0 = arith.constant 0 : i32
    %c0_i32_1 = arith.constant 0 : i32
    return %c0_i32, %c0_i32_0 : i32, i32
  }
  func.func @transform_5(%arg0: i32, %arg1: i32) -> (i32, i32) {
    %c0_i32 = arith.constant 0 : i32
    %c0_i32_0 = arith.constant 0 : i32
    %c0_i32_1 = arith.constant 0 : i32
    return %c0_i32, %c0_i32_0 : i32, i32
  }
  func.func @transform_6(%arg0: i32, %arg1: i32) -> (i32, i32) {
    %c0_i32 = arith.constant 0 : i32
    %c0_i32_0 = arith.constant 0 : i32
    %c0_i32_1 = arith.constant 0 : i32
    return %c0_i32, %c0_i32_0 : i32, i32
  }
  func.func @transform_7(%arg0: i32, %arg1: i32) -> (i32, i32) {
    %c0_i32 = arith.constant 0 : i32
    %c0_i32_0 = arith.constant 0 : i32
    %c0_i32_1 = arith.constant 0 : i32
    return %c0_i32, %c0_i32_0 : i32, i32
  }
  func.func @transform_8(%arg0: i32, %arg1: i32) -> (i32, i32) {
    %c0_i32 = arith.constant 0 : i32
    %c0_i32_0 = arith.constant 0 : i32
    %c0_i32_1 = arith.constant 0 : i32
    return %c0_i32, %c0_i32_0 : i32, i32
  }
  func.func @transform_9(%arg0: i32, %arg1: i32) -> (i32, i32) {
    %c0_i32 = arith.constant 0 : i32
    %c0_i32_0 = arith.constant 0 : i32
    %c0_i32_1 = arith.constant 0 : i32
    return %c0_i32, %c0_i32_0 : i32, i32
  }
  func.func @transform_10(%arg0: i32, %arg1: i32) -> (i32, i32) {
    %c0_i32 = arith.constant 0 : i32
    %c0_i32_0 = arith.constant 0 : i32
    %c0_i32_1 = arith.constant 0 : i32
    return %c0_i32, %c0_i32_0 : i32, i32
  }
  func.func @transform_11(%arg0: i32, %arg1: i32) -> (i32, i32) {
    %c0_i32 = arith.constant 0 : i32
    %c0_i32_0 = arith.constant 0 : i32
    %c0_i32_1 = arith.constant 0 : i32
    return %c0_i32, %c0_i32_0 : i32, i32
  }
  func.func @transform_12(%arg0: i32, %arg1: i32) -> (i32, i32, i32) {
    %c0_i32 = arith.constant 0 : i32
    %c0_i32_0 = arith.constant 0 : i32
    return %arg0, %arg1, %c0_i32 : i32, i32, i32
  }
}

module attributes {stable_mosaic.version = 11 : i64} {
  func.func @s5_block_kernel(%arg0: i32, %arg1: i32, %arg2: memref<1x8x32xf32, #tpu.memory_space<vmem>>, %arg3: memref<1x32xf32, #tpu.memory_space<vmem>>, %arg4: memref<1x32xf32, #tpu.memory_space<vmem>>, %arg5: memref<1x128xf32, #tpu.memory_space<vmem>>, %arg6: memref<1x128xf32, #tpu.memory_space<vmem>>, %arg7: memref<256x32xbf16, #tpu.memory_space<vmem>>, %arg8: memref<32x256xbf16, #tpu.memory_space<vmem>>, %arg9: memref<1x32xf32, #tpu.memory_space<vmem>>, %arg10: memref<1x32xf32, #tpu.memory_space<vmem>>, %arg11: memref<1x32xf32, #tpu.memory_space<vmem>>, %arg12: memref<64x32xbf16, #tpu.memory_space<vmem>>, %arg13: memref<32x32xbf16, #tpu.memory_space<vmem>>, %arg14: memref<1x8x32xf32, #tpu.memory_space<vmem>>, %arg15: memref<1x128xf32, #tpu.memory_space<vmem>>, %arg16: memref<1x128xf32, #tpu.memory_space<vmem>>) attributes {dimension_semantics = [#tpu.dimension_semantics<parallel>, #tpu.dimension_semantics<arbitrary>], iteration_bounds = array<i64: 2, 4>, scalar_prefetch = 0 : i64, scratch_operands = 2 : i64, tpu.core_type = #tpu.core_type<tc>, window_params = [{transform_indices = @transform_0, window_bounds = array<i64: 1, 8, 32>}, {pipeline_mode = #tpu.pipeline_mode<synchronous>, transform_indices = @transform_1, window_bounds = array<i64: 1, 32>}, {pipeline_mode = #tpu.pipeline_mode<synchronous>, transform_indices = @transform_2, window_bounds = array<i64: 1, 32>}, {pipeline_mode = #tpu.pipeline_mode<synchronous>, transform_indices = @transform_3, window_bounds = array<i64: 1, 128>}, {pipeline_mode = #tpu.pipeline_mode<synchronous>, transform_indices = @transform_4, window_bounds = array<i64: 1, 128>}, {pipeline_mode = #tpu.pipeline_mode<synchronous>, transform_indices = @transform_5, window_bounds = array<i64: 256, 32>}, {pipeline_mode = #tpu.pipeline_mode<synchronous>, transform_indices = @transform_6, window_bounds = array<i64: 32, 256>}, {pipeline_mode = #tpu.pipeline_mode<synchronous>, transform_indices = @transform_7, window_bounds = array<i64: 1, 32>}, {pipeline_mode = #tpu.pipeline_mode<synchronous>, transform_indices = @transform_8, window_bounds = array<i64: 1, 32>}, {pipeline_mode = #tpu.pipeline_mode<synchronous>, transform_indices = @transform_9, window_bounds = array<i64: 1, 32>}, {pipeline_mode = #tpu.pipeline_mode<synchronous>, transform_indices = @transform_10, window_bounds = array<i64: 64, 32>}, {pipeline_mode = #tpu.pipeline_mode<synchronous>, transform_indices = @transform_11, window_bounds = array<i64: 32, 32>}, {transform_indices = @transform_12, window_bounds = array<i64: 1, 8, 32>}]} {
    %c0_i32 = arith.constant 0 : i32
    %0 = arith.cmpi eq, %arg1, %c0_i32 : i32
    %1 = arith.extui %0 : i1 to i32
    %c0_i32_0 = arith.constant 0 : i32
    %2 = arith.cmpi ne, %1, %c0_i32_0 : i32
    scf.if %2 {
      %cst_80 = arith.constant 0.000000e+00 : f32
      %254 = vector.broadcast %cst_80 : f32 to vector<1x128xf32>
      %c0_81 = arith.constant 0 : index
      %c0_82 = arith.constant 0 : index
      %255 = vector.load %arg15[%c0_81, %c0_82] : memref<1x128xf32, #tpu.memory_space<vmem>>, vector<1x128xf32>
      tpu.vector_store %arg15[%c0_81, %c0_82], %254 {strides = array<i32>} : memref<1x128xf32, #tpu.memory_space<vmem>>, vector<1x128xf32>,
      %cst_83 = arith.constant 0.000000e+00 : f32
      %256 = vector.broadcast %cst_83 : f32 to vector<1x128xf32>
      %c0_84 = arith.constant 0 : index
      %c0_85 = arith.constant 0 : index
      %257 = vector.load %arg16[%c0_84, %c0_85] : memref<1x128xf32, #tpu.memory_space<vmem>>, vector<1x128xf32>
      tpu.vector_store %arg16[%c0_84, %c0_85], %256 {strides = array<i32>} : memref<1x128xf32, #tpu.memory_space<vmem>>, vector<1x128xf32>,
    } else {
    }
    %c0 = arith.constant 0 : index
    %c0_1 = arith.constant 0 : index
    %c0_2 = arith.constant 0 : index
    %3 = vector.load %arg2[%c0, %c0_1, %c0_2] : memref<1x8x32xf32, #tpu.memory_space<vmem>>, vector<1x8x32xf32>
    %4 = vector.shape_cast %3 : vector<1x8x32xf32> to vector<8x32xf32>
    %c0_3 = arith.constant 0 : index
    %c0_4 = arith.constant 0 : index
    %5 = vector.load %arg3[%c0_3, %c0_4] : memref<1x32xf32, #tpu.memory_space<vmem>>, vector<1x32xf32>
    %c0_5 = arith.constant 0 : index
    %c0_6 = arith.constant 0 : index
    %6 = vector.load %arg4[%c0_5, %c0_6] : memref<1x32xf32, #tpu.memory_space<vmem>>, vector<1x32xf32>
    %cst = arith.constant dense<0.000000e+00> : vector<8xf32>
    %7 = vector.multi_reduction <add>, %4, %cst [1] : vector<8x32xf32> to vector<8xf32>
    %8 = vector.shape_cast %7 : vector<8xf32> to vector<8x1xf32>
    %cst_7 = arith.constant 3.200000e+01 : f32
    %9 = vector.broadcast %cst_7 : f32 to vector<8x1xf32>
    %10 = arith.divf %8, %9 : vector<8x1xf32>
    %11 = vector.broadcast %10 : vector<8x1xf32> to vector<8x32xf32>
    %12 = arith.subf %4, %11 : vector<8x32xf32>
    %13 = vector.broadcast %10 : vector<8x1xf32> to vector<8x32xf32>
    %14 = arith.subf %4, %13 : vector<8x32xf32>
    %15 = arith.mulf %12, %14 : vector<8x32xf32>
    %cst_8 = arith.constant dense<0.000000e+00> : vector<8xf32>
    %16 = vector.multi_reduction <add>, %15, %cst_8 [1] : vector<8x32xf32> to vector<8xf32>
    %17 = vector.shape_cast %16 : vector<8xf32> to vector<8x1xf32>
    %cst_9 = arith.constant 3.200000e+01 : f32
    %18 = vector.broadcast %cst_9 : f32 to vector<8x1xf32>
    %19 = arith.divf %17, %18 : vector<8x1xf32>
    %20 = vector.broadcast %10 : vector<8x1xf32> to vector<8x32xf32>
    %21 = arith.subf %4, %20 : vector<8x32xf32>
    %cst_10 = arith.constant 9.99999974E-6 : f32
    %22 = vector.broadcast %cst_10 : f32 to vector<8x1xf32>
    %23 = arith.addf %19, %22 : vector<8x1xf32>
    %24 = math.rsqrt %23 : vector<8x1xf32>
    %25 = vector.broadcast %24 : vector<8x1xf32> to vector<8x32xf32>
    %26 = arith.mulf %21, %25 : vector<8x32xf32>
    %27 = vector.broadcast %5 : vector<1x32xf32> to vector<8x32xf32>
    %28 = arith.mulf %26, %27 : vector<8x32xf32>
    %29 = vector.broadcast %6 : vector<1x32xf32> to vector<8x32xf32>
    %30 = arith.addf %28, %29 : vector<8x32xf32>
    %31 = arith.truncf %30 : vector<8x32xf32> to vector<8x32xbf16>
    %c0_11 = arith.constant 0 : index
    %c0_12 = arith.constant 0 : index
    %32 = vector.load %arg7[%c0_11, %c0_12] : memref<256x32xbf16, #tpu.memory_space<vmem>>, vector<256x32xbf16>
    %cst_13 = arith.constant dense<0.000000e+00> : vector<8x256xf32>
    %33 = tpu.matmul %31, %32, %cst_13 {dimension_numbers = #tpu.dot_dimension_numbers<[1], [1], [0], [0], [0, 0, 1, 0], [], []>} : vector<8x32xbf16>, vector<256x32xbf16>, vector<8x256xf32> -> vector<8x256xf32>
    %34 = vector.extract_strided_slice %33 {offsets = [0, 0], sizes = [8, 128], strides = [1, 1]} : vector<8x256xf32> to vector<8x128xf32>
    %35 = vector.extract_strided_slice %33 {offsets = [0, 128], sizes = [8, 128], strides = [1, 1]} : vector<8x256xf32> to vector<8x128xf32>
    %c0_14 = arith.constant 0 : index
    %c0_15 = arith.constant 0 : index
    %36 = vector.load %arg5[%c0_14, %c0_15] : memref<1x128xf32, #tpu.memory_space<vmem>>, vector<1x128xf32>
    %c0_16 = arith.constant 0 : index
    %c0_17 = arith.constant 0 : index
    %37 = vector.load %arg6[%c0_16, %c0_17] : memref<1x128xf32, #tpu.memory_space<vmem>>, vector<1x128xf32>
    %c0_18 = arith.constant 0 : index
    %c0_19 = arith.constant 0 : index
    %38 = vector.load %arg15[%c0_18, %c0_19] : memref<1x128xf32, #tpu.memory_space<vmem>>, vector<1x128xf32>
    %c0_20 = arith.constant 0 : index
    %c0_21 = arith.constant 0 : index
    %39 = vector.load %arg16[%c0_20, %c0_21] : memref<1x128xf32, #tpu.memory_space<vmem>>, vector<1x128xf32>
    %40 = vector.extract_strided_slice %34 {offsets = [0, 0], sizes = [1, 128], strides = [1, 1]} : vector<8x128xf32> to vector<1x128xf32>
    %41 = vector.extract_strided_slice %35 {offsets = [0, 0], sizes = [1, 128], strides = [1, 1]} : vector<8x128xf32> to vector<1x128xf32>
    %42 = arith.mulf %36, %38 : vector<1x128xf32>
    %43 = arith.mulf %37, %39 : vector<1x128xf32>
    %44 = arith.subf %42, %43 : vector<1x128xf32>
    %45 = arith.addf %44, %40 : vector<1x128xf32>
    %46 = arith.mulf %36, %39 : vector<1x128xf32>
    %47 = arith.mulf %37, %38 : vector<1x128xf32>
    %48 = arith.addf %46, %47 : vector<1x128xf32>
    %49 = arith.addf %48, %41 : vector<1x128xf32>
    %50 = vector.extract_strided_slice %34 {offsets = [1, 0], sizes = [1, 128], strides = [1, 1]} : vector<8x128xf32> to vector<1x128xf32>
    %51 = vector.extract_strided_slice %35 {offsets = [1, 0], sizes = [1, 128], strides = [1, 1]} : vector<8x128xf32> to vector<1x128xf32>
    %52 = arith.mulf %36, %45 : vector<1x128xf32>
    %53 = arith.mulf %37, %49 : vector<1x128xf32>
    %54 = arith.subf %52, %53 : vector<1x128xf32>
    %55 = arith.addf %54, %50 : vector<1x128xf32>
    %56 = arith.mulf %36, %49 : vector<1x128xf32>
    %57 = arith.mulf %37, %45 : vector<1x128xf32>
    %58 = arith.addf %56, %57 : vector<1x128xf32>
    %59 = arith.addf %58, %51 : vector<1x128xf32>
    %60 = vector.extract_strided_slice %34 {offsets = [2, 0], sizes = [1, 128], strides = [1, 1]} : vector<8x128xf32> to vector<1x128xf32>
    %61 = vector.extract_strided_slice %35 {offsets = [2, 0], sizes = [1, 128], strides = [1, 1]} : vector<8x128xf32> to vector<1x128xf32>
    %62 = arith.mulf %36, %55 : vector<1x128xf32>
    %63 = arith.mulf %37, %59 : vector<1x128xf32>
    %64 = arith.subf %62, %63 : vector<1x128xf32>
    %65 = arith.addf %64, %60 : vector<1x128xf32>
    %66 = arith.mulf %36, %59 : vector<1x128xf32>
    %67 = arith.mulf %37, %55 : vector<1x128xf32>
    %68 = arith.addf %66, %67 : vector<1x128xf32>
    %69 = arith.addf %68, %61 : vector<1x128xf32>
    %70 = vector.extract_strided_slice %34 {offsets = [3, 0], sizes = [1, 128], strides = [1, 1]} : vector<8x128xf32> to vector<1x128xf32>
    %71 = vector.extract_strided_slice %35 {offsets = [3, 0], sizes = [1, 128], strides = [1, 1]} : vector<8x128xf32> to vector<1x128xf32>
    %72 = arith.mulf %36, %65 : vector<1x128xf32>
    %73 = arith.mulf %37, %69 : vector<1x128xf32>
    %74 = arith.subf %72, %73 : vector<1x128xf32>
    %75 = arith.addf %74, %70 : vector<1x128xf32>
    %76 = arith.mulf %36, %69 : vector<1x128xf32>
    %77 = arith.mulf %37, %65 : vector<1x128xf32>
    %78 = arith.addf %76, %77 : vector<1x128xf32>
    %79 = arith.addf %78, %71 : vector<1x128xf32>
    %80 = vector.extract_strided_slice %34 {offsets = [4, 0], sizes = [1, 128], strides = [1, 1]} : vector<8x128xf32> to vector<1x128xf32>
    %81 = vector.extract_strided_slice %35 {offsets = [4, 0], sizes = [1, 128], strides = [1, 1]} : vector<8x128xf32> to vector<1x128xf32>
    %82 = arith.mulf %36, %75 : vector<1x128xf32>
    %83 = arith.mulf %37, %79 : vector<1x128xf32>
    %84 = arith.subf %82, %83 : vector<1x128xf32>
    %85 = arith.addf %84, %80 : vector<1x128xf32>
    %86 = arith.mulf %36, %79 : vector<1x128xf32>
    %87 = arith.mulf %37, %75 : vector<1x128xf32>
    %88 = arith.addf %86, %87 : vector<1x128xf32>
    %89 = arith.addf %88, %81 : vector<1x128xf32>
    %90 = vector.extract_strided_slice %34 {offsets = [5, 0], sizes = [1, 128], strides = [1, 1]} : vector<8x128xf32> to vector<1x128xf32>
    %91 = vector.extract_strided_slice %35 {offsets = [5, 0], sizes = [1, 128], strides = [1, 1]} : vector<8x128xf32> to vector<1x128xf32>
    %92 = arith.mulf %36, %85 : vector<1x128xf32>
    %93 = arith.mulf %37, %89 : vector<1x128xf32>
    %94 = arith.subf %92, %93 : vector<1x128xf32>
    %95 = arith.addf %94, %90 : vector<1x128xf32>
    %96 = arith.mulf %36, %89 : vector<1x128xf32>
    %97 = arith.mulf %37, %85 : vector<1x128xf32>
    %98 = arith.addf %96, %97 : vector<1x128xf32>
    %99 = arith.addf %98, %91 : vector<1x128xf32>
    %100 = vector.extract_strided_slice %34 {offsets = [6, 0], sizes = [1, 128], strides = [1, 1]} : vector<8x128xf32> to vector<1x128xf32>
    %101 = vector.extract_strided_slice %35 {offsets = [6, 0], sizes = [1, 128], strides = [1, 1]} : vector<8x128xf32> to vector<1x128xf32>
    %102 = arith.mulf %36, %95 : vector<1x128xf32>
    %103 = arith.mulf %37, %99 : vector<1x128xf32>
    %104 = arith.subf %102, %103 : vector<1x128xf32>
    %105 = arith.addf %104, %100 : vector<1x128xf32>
    %106 = arith.mulf %36, %99 : vector<1x128xf32>
    %107 = arith.mulf %37, %95 : vector<1x128xf32>
    %108 = arith.addf %106, %107 : vector<1x128xf32>
    %109 = arith.addf %108, %101 : vector<1x128xf32>
    %110 = vector.extract_strided_slice %34 {offsets = [7, 0], sizes = [1, 128], strides = [1, 1]} : vector<8x128xf32> to vector<1x128xf32>
    %111 = vector.extract_strided_slice %35 {offsets = [7, 0], sizes = [1, 128], strides = [1, 1]} : vector<8x128xf32> to vector<1x128xf32>
    %112 = arith.mulf %36, %105 : vector<1x128xf32>
    %113 = arith.mulf %37, %109 : vector<1x128xf32>
    %114 = arith.subf %112, %113 : vector<1x128xf32>
    %115 = arith.addf %114, %110 : vector<1x128xf32>
    %116 = arith.mulf %36, %109 : vector<1x128xf32>
    %117 = arith.mulf %37, %105 : vector<1x128xf32>
    %118 = arith.addf %116, %117 : vector<1x128xf32>
    %119 = arith.addf %118, %111 : vector<1x128xf32>
    %c0_22 = arith.constant 0 : index
    %c0_23 = arith.constant 0 : index
    %120 = vector.load %arg15[%c0_22, %c0_23] : memref<1x128xf32, #tpu.memory_space<vmem>>, vector<1x128xf32>
    tpu.vector_store %arg15[%c0_22, %c0_23], %115 {strides = array<i32>} : memref<1x128xf32, #tpu.memory_space<vmem>>, vector<1x128xf32>,
    %c0_24 = arith.constant 0 : index
    %c0_25 = arith.constant 0 : index
    %121 = vector.load %arg16[%c0_24, %c0_25] : memref<1x128xf32, #tpu.memory_space<vmem>>, vector<1x128xf32>
    tpu.vector_store %arg16[%c0_24, %c0_25], %119 {strides = array<i32>} : memref<1x128xf32, #tpu.memory_space<vmem>>, vector<1x128xf32>,
    %122 = tpu.concatenate %45, %55, %65, %75, %85, %95, %105, %115 in 0 : vector<1x128xf32>, vector<1x128xf32>, vector<1x128xf32>, vector<1x128xf32>, vector<1x128xf32>, vector<1x128xf32>, vector<1x128xf32>, vector<1x128xf32> -> vector<8x128xf32>
    %123 = tpu.concatenate %49, %59, %69, %79, %89, %99, %109, %119 in 0 : vector<1x128xf32>, vector<1x128xf32>, vector<1x128xf32>, vector<1x128xf32>, vector<1x128xf32>, vector<1x128xf32>, vector<1x128xf32>, vector<1x128xf32> -> vector<8x128xf32>
    %124 = tpu.concatenate %122, %123 in 1 : vector<8x128xf32>, vector<8x128xf32> -> vector<8x256xf32>
    %125 = arith.truncf %124 : vector<8x256xf32> to vector<8x256xbf16>
    %c0_26 = arith.constant 0 : index
    %c0_27 = arith.constant 0 : index
    %126 = vector.load %arg8[%c0_26, %c0_27] : memref<32x256xbf16, #tpu.memory_space<vmem>>, vector<32x256xbf16>
    %cst_28 = arith.constant dense<0.000000e+00> : vector<8x32xf32>
    %127 = tpu.matmul %125, %126, %cst_28 {dimension_numbers = #tpu.dot_dimension_numbers<[1], [1], [0], [0], [0, 0, 1, 0], [], []>} : vector<8x256xbf16>, vector<32x256xbf16>, vector<8x32xf32> -> vector<8x32xf32>
    %cst_29 = arith.constant 2.000000e+00 : f32
    %128 = vector.broadcast %cst_29 : f32 to vector<8x32xf32>
    %129 = arith.mulf %128, %127 : vector<8x32xf32>
    %c0_30 = arith.constant 0 : index
    %c0_31 = arith.constant 0 : index
    %130 = vector.load %arg9[%c0_30, %c0_31] : memref<1x32xf32, #tpu.memory_space<vmem>>, vector<1x32xf32>
    %131 = vector.broadcast %130 : vector<1x32xf32> to vector<8x32xf32>
    %132 = arith.mulf %30, %131 : vector<8x32xf32>
    %133 = arith.addf %129, %132 : vector<8x32xf32>
    %cst_32 = arith.constant 5.000000e-01 : f32
    %134 = vector.broadcast %cst_32 : f32 to vector<8x32xf32>
    %135 = arith.mulf %134, %133 : vector<8x32xf32>
    %cst_33 = arith.constant 0.707106769 : f32
    %136 = vector.broadcast %cst_33 : f32 to vector<8x32xf32>
    %137 = arith.mulf %133, %136 : vector<8x32xf32>
    %cst_34 = arith.constant 0.000000e+00 : f32
    %138 = vector.broadcast %cst_34 : f32 to vector<8x32xf32>
    %139 = arith.cmpf oge, %137, %138 : vector<8x32xf32>
    %cst_35 = arith.constant 1.000000e+00 : f32
    %cst_36 = arith.constant -1.000000e+00 : f32
    %140 = vector.broadcast %cst_35 : f32 to vector<8x32xf32>
    %141 = vector.broadcast %cst_36 : f32 to vector<8x32xf32>
    %142 = arith.select %139, %140, %141 : vector<8x32xi1>, vector<8x32xf32>
    %143 = math.absf %137 : vector<8x32xf32>
    %cst_37 = arith.constant 0.327591091 : f32
    %144 = vector.broadcast %cst_37 : f32 to vector<8x32xf32>
    %145 = arith.mulf %144, %143 : vector<8x32xf32>
    %cst_38 = arith.constant 1.000000e+00 : f32
    %146 = vector.broadcast %cst_38 : f32 to vector<8x32xf32>
    %147 = arith.addf %146, %145 : vector<8x32xf32>
    %148 = tpu.reciprocal %147 {approx = true} : vector<8x32xf32> -> vector<8x32xf32>
    %cst_39 = arith.constant 1.06140542 : f32
    %149 = vector.broadcast %cst_39 : f32 to vector<8x32xf32>
    %150 = arith.mulf %148, %149 : vector<8x32xf32>
    %cst_40 = arith.constant -1.45315206 : f32
    %151 = vector.broadcast %cst_40 : f32 to vector<8x32xf32>
    %152 = arith.addf %151, %150 : vector<8x32xf32>
    %153 = arith.mulf %148, %152 : vector<8x32xf32>
    %cst_41 = arith.constant 1.42141378 : f32
    %154 = vector.broadcast %cst_41 : f32 to vector<8x32xf32>
    %155 = arith.addf %154, %153 : vector<8x32xf32>
    %156 = arith.mulf %148, %155 : vector<8x32xf32>
    %cst_42 = arith.constant -0.284496725 : f32
    %157 = vector.broadcast %cst_42 : f32 to vector<8x32xf32>
    %158 = arith.addf %157, %156 : vector<8x32xf32>
    %159 = arith.mulf %148, %158 : vector<8x32xf32>
    %cst_43 = arith.constant 0.254829586 : f32
    %160 = vector.broadcast %cst_43 : f32 to vector<8x32xf32>
    %161 = arith.addf %160, %159 : vector<8x32xf32>
    %162 = arith.mulf %148, %161 : vector<8x32xf32>
    %cst_44 = arith.constant 0.000000e+00 : f32
    %163 = vector.broadcast %cst_44 : f32 to vector<8x32xf32>
    %164 = arith.subf %163, %143 : vector<8x32xf32>
    %165 = arith.mulf %164, %143 : vector<8x32xf32>
    %166 = math.exp %165 : vector<8x32xf32>
    %167 = arith.mulf %162, %166 : vector<8x32xf32>
    %cst_45 = arith.constant 1.000000e+00 : f32
    %168 = vector.broadcast %cst_45 : f32 to vector<8x32xf32>
    %169 = arith.subf %168, %167 : vector<8x32xf32>
    %170 = arith.mulf %142, %169 : vector<8x32xf32>
    %cst_46 = arith.constant 1.000000e+00 : f32
    %171 = vector.broadcast %cst_46 : f32 to vector<8x32xf32>
    %172 = arith.addf %171, %170 : vector<8x32xf32>
    %173 = arith.mulf %135, %172 : vector<8x32xf32>
    %174 = arith.addf %173, %30 : vector<8x32xf32>
    %c0_47 = arith.constant 0 : index
    %c0_48 = arith.constant 0 : index
    %175 = vector.load %arg10[%c0_47, %c0_48] : memref<1x32xf32, #tpu.memory_space<vmem>>, vector<1x32xf32>
    %c0_49 = arith.constant 0 : index
    %c0_50 = arith.constant 0 : index
    %176 = vector.load %arg11[%c0_49, %c0_50] : memref<1x32xf32, #tpu.memory_space<vmem>>, vector<1x32xf32>
    %cst_51 = arith.constant dense<0.000000e+00> : vector<8xf32>
    %177 = vector.multi_reduction <add>, %174, %cst_51 [1] : vector<8x32xf32> to vector<8xf32>
    %178 = vector.shape_cast %177 : vector<8xf32> to vector<8x1xf32>
    %cst_52 = arith.constant 3.200000e+01 : f32
    %179 = vector.broadcast %cst_52 : f32 to vector<8x1xf32>
    %180 = arith.divf %178, %179 : vector<8x1xf32>
    %181 = vector.broadcast %180 : vector<8x1xf32> to vector<8x32xf32>
    %182 = arith.subf %174, %181 : vector<8x32xf32>
    %183 = vector.broadcast %180 : vector<8x1xf32> to vector<8x32xf32>
    %184 = arith.subf %174, %183 : vector<8x32xf32>
    %185 = arith.mulf %182, %184 : vector<8x32xf32>
    %cst_53 = arith.constant dense<0.000000e+00> : vector<8xf32>
    %186 = vector.multi_reduction <add>, %185, %cst_53 [1] : vector<8x32xf32> to vector<8xf32>
    %187 = vector.shape_cast %186 : vector<8xf32> to vector<8x1xf32>
    %cst_54 = arith.constant 3.200000e+01 : f32
    %188 = vector.broadcast %cst_54 : f32 to vector<8x1xf32>
    %189 = arith.divf %187, %188 : vector<8x1xf32>
    %190 = vector.broadcast %180 : vector<8x1xf32> to vector<8x32xf32>
    %191 = arith.subf %174, %190 : vector<8x32xf32>
    %cst_55 = arith.constant 9.99999974E-6 : f32
    %192 = vector.broadcast %cst_55 : f32 to vector<8x1xf32>
    %193 = arith.addf %189, %192 : vector<8x1xf32>
    %194 = math.rsqrt %193 : vector<8x1xf32>
    %195 = vector.broadcast %194 : vector<8x1xf32> to vector<8x32xf32>
    %196 = arith.mulf %191, %195 : vector<8x32xf32>
    %197 = vector.broadcast %175 : vector<1x32xf32> to vector<8x32xf32>
    %198 = arith.mulf %196, %197 : vector<8x32xf32>
    %199 = vector.broadcast %176 : vector<1x32xf32> to vector<8x32xf32>
    %200 = arith.addf %198, %199 : vector<8x32xf32>
    %201 = arith.truncf %200 : vector<8x32xf32> to vector<8x32xbf16>
    %c0_56 = arith.constant 0 : index
    %c0_57 = arith.constant 0 : index
    %202 = vector.load %arg12[%c0_56, %c0_57] : memref<64x32xbf16, #tpu.memory_space<vmem>>, vector<64x32xbf16>
    %cst_58 = arith.constant dense<0.000000e+00> : vector<8x64xf32>
    %203 = tpu.matmul %201, %202, %cst_58 {dimension_numbers = #tpu.dot_dimension_numbers<[1], [1], [0], [0], [0, 0, 1, 0], [], []>} : vector<8x32xbf16>, vector<64x32xbf16>, vector<8x64xf32> -> vector<8x64xf32>
    %204 = vector.extract_strided_slice %203 {offsets = [0, 0], sizes = [8, 32], strides = [1, 1]} : vector<8x64xf32> to vector<8x32xf32>
    %205 = vector.extract_strided_slice %203 {offsets = [0, 32], sizes = [8, 32], strides = [1, 1]} : vector<8x64xf32> to vector<8x32xf32>
    %cst_59 = arith.constant 5.000000e-01 : f32
    %206 = vector.broadcast %cst_59 : f32 to vector<8x32xf32>
    %207 = arith.mulf %206, %205 : vector<8x32xf32>
    %cst_60 = arith.constant 0.707106769 : f32
    %208 = vector.broadcast %cst_60 : f32 to vector<8x32xf32>
    %209 = arith.mulf %205, %208 : vector<8x32xf32>
    %cst_61 = arith.constant 0.000000e+00 : f32
    %210 = vector.broadcast %cst_61 : f32 to vector<8x32xf32>
    %211 = arith.cmpf oge, %209, %210 : vector<8x32xf32>
    %cst_62 = arith.constant 1.000000e+00 : f32
    %cst_63 = arith.constant -1.000000e+00 : f32
    %212 = vector.broadcast %cst_62 : f32 to vector<8x32xf32>
    %213 = vector.broadcast %cst_63 : f32 to vector<8x32xf32>
    %214 = arith.select %211, %212, %213 : vector<8x32xi1>, vector<8x32xf32>
    %215 = math.absf %209 : vector<8x32xf32>
    %cst_64 = arith.constant 0.327591091 : f32
    %216 = vector.broadcast %cst_64 : f32 to vector<8x32xf32>
    %217 = arith.mulf %216, %215 : vector<8x32xf32>
    %cst_65 = arith.constant 1.000000e+00 : f32
    %218 = vector.broadcast %cst_65 : f32 to vector<8x32xf32>
    %219 = arith.addf %218, %217 : vector<8x32xf32>
    %220 = tpu.reciprocal %219 {approx = true} : vector<8x32xf32> -> vector<8x32xf32>
    %cst_66 = arith.constant 1.06140542 : f32
    %221 = vector.broadcast %cst_66 : f32 to vector<8x32xf32>
    %222 = arith.mulf %220, %221 : vector<8x32xf32>
    %cst_67 = arith.constant -1.45315206 : f32
    %223 = vector.broadcast %cst_67 : f32 to vector<8x32xf32>
    %224 = arith.addf %223, %222 : vector<8x32xf32>
    %225 = arith.mulf %220, %224 : vector<8x32xf32>
    %cst_68 = arith.constant 1.42141378 : f32
    %226 = vector.broadcast %cst_68 : f32 to vector<8x32xf32>
    %227 = arith.addf %226, %225 : vector<8x32xf32>
    %228 = arith.mulf %220, %227 : vector<8x32xf32>
    %cst_69 = arith.constant -0.284496725 : f32
    %229 = vector.broadcast %cst_69 : f32 to vector<8x32xf32>
    %230 = arith.addf %229, %228 : vector<8x32xf32>
    %231 = arith.mulf %220, %230 : vector<8x32xf32>
    %cst_70 = arith.constant 0.254829586 : f32
    %232 = vector.broadcast %cst_70 : f32 to vector<8x32xf32>
    %233 = arith.addf %232, %231 : vector<8x32xf32>
    %234 = arith.mulf %220, %233 : vector<8x32xf32>
    %cst_71 = arith.constant 0.000000e+00 : f32
    %235 = vector.broadcast %cst_71 : f32 to vector<8x32xf32>
    %236 = arith.subf %235, %215 : vector<8x32xf32>
    %237 = arith.mulf %236, %215 : vector<8x32xf32>
    %238 = math.exp %237 : vector<8x32xf32>
    %239 = arith.mulf %234, %238 : vector<8x32xf32>
    %cst_72 = arith.constant 1.000000e+00 : f32
    %240 = vector.broadcast %cst_72 : f32 to vector<8x32xf32>
    %241 = arith.subf %240, %239 : vector<8x32xf32>
    %242 = arith.mulf %214, %241 : vector<8x32xf32>
    %cst_73 = arith.constant 1.000000e+00 : f32
    %243 = vector.broadcast %cst_73 : f32 to vector<8x32xf32>
    %244 = arith.addf %243, %242 : vector<8x32xf32>
    %245 = arith.mulf %207, %244 : vector<8x32xf32>
    %246 = arith.mulf %204, %245 : vector<8x32xf32>
    %247 = arith.truncf %246 : vector<8x32xf32> to vector<8x32xbf16>
    %c0_74 = arith.constant 0 : index
    %c0_75 = arith.constant 0 : index
    %248 = vector.load %arg13[%c0_74, %c0_75] : memref<32x32xbf16, #tpu.memory_space<vmem>>, vector<32x32xbf16>
    %cst_76 = arith.constant dense<0.000000e+00> : vector<8x32xf32>
    %249 = tpu.matmul %247, %248, %cst_76 {dimension_numbers = #tpu.dot_dimension_numbers<[1], [1], [0], [0], [0, 0, 1, 0], [], []>} : vector<8x32xbf16>, vector<32x32xbf16>, vector<8x32xf32> -> vector<8x32xf32>
    %250 = arith.addf %249, %200 : vector<8x32xf32>
    %c0_77 = arith.constant 0 : index
    %c0_78 = arith.constant 0 : index
    %c0_79 = arith.constant 0 : index
    %251 = vector.load %arg14[%c0_77, %c0_78, %c0_79] : memref<1x8x32xf32, #tpu.memory_space<vmem>>, vector<1x8x32xf32>
    %252 = vector.shape_cast %251 : vector<1x8x32xf32> to vector<8x32xf32>
    %253 = vector.shape_cast %250 : vector<8x32xf32> to vector<1x8x32xf32>
    tpu.vector_store %arg14[%c0_77, %c0_78, %c0_79], %253 {strides = array<i32>} : memref<1x8x32xf32, #tpu.memory_space<vmem>>, vector<1x8x32xf32>,
    return
  }
  func.func @transform_0(%arg0: i32, %arg1: i32) -> (i32, i32, i32) {
    %c0_i32 = arith.constant 0 : i32
    %c0_i32_0 = arith.constant 0 : i32
    return %arg0, %arg1, %c0_i32 : i32, i32, i32
  }
  func.func @transform_1(%arg0: i32, %arg1: i32) -> (i32, i32) {
    %c0_i32 = arith.constant 0 : i32
    %c0_i32_0 = arith.constant 0 : i32
    %c0_i32_1 = arith.constant 0 : i32
    return %c0_i32, %c0_i32_0 : i32, i32
  }
  func.func @transform_2(%arg0: i32, %arg1: i32) -> (i32, i32) {
    %c0_i32 = arith.constant 0 : i32
    %c0_i32_0 = arith.constant 0 : i32
    %c0_i32_1 = arith.constant 0 : i32
    return %c0_i32, %c0_i32_0 : i32, i32
  }
  func.func @transform_3(%arg0: i32, %arg1: i32) -> (i32, i32) {
    %c0_i32 = arith.constant 0 : i32
    %c0_i32_0 = arith.constant 0 : i32
    %c0_i32_1 = arith.constant 0 : i32
    return %c0_i32, %c0_i32_0 : i32, i32
  }
  func.func @transform_4(%arg0: i32, %arg1: i32) -> (i32, i32) {
    %c0_i32 = arith.constant 0 : i32
    %c0_i32_0 = arith.constant 0 : i32
    %c0_i32_1 = arith.constant 0 : i32
    return %c0_i32, %c0_i32_0 : i32, i32
  }
  func.func @transform_5(%arg0: i32, %arg1: i32) -> (i32, i32) {
    %c0_i32 = arith.constant 0 : i32
    %c0_i32_0 = arith.constant 0 : i32
    %c0_i32_1 = arith.constant 0 : i32
    return %c0_i32, %c0_i32_0 : i32, i32
  }
  func.func @transform_6(%arg0: i32, %arg1: i32) -> (i32, i32) {
    %c0_i32 = arith.constant 0 : i32
    %c0_i32_0 = arith.constant 0 : i32
    %c0_i32_1 = arith.constant 0 : i32
    return %c0_i32, %c0_i32_0 : i32, i32
  }
  func.func @transform_7(%arg0: i32, %arg1: i32) -> (i32, i32) {
    %c0_i32 = arith.constant 0 : i32
    %c0_i32_0 = arith.constant 0 : i32
    %c0_i32_1 = arith.constant 0 : i32
    return %c0_i32, %c0_i32_0 : i32, i32
  }
  func.func @transform_8(%arg0: i32, %arg1: i32) -> (i32, i32) {
    %c0_i32 = arith.constant 0 : i32
    %c0_i32_0 = arith.constant 0 : i32
    %c0_i32_1 = arith.constant 0 : i32
    return %c0_i32, %c0_i32_0 : i32, i32
  }
  func.func @transform_9(%arg0: i32, %arg1: i32) -> (i32, i32) {
    %c0_i32 = arith.constant 0 : i32
    %c0_i32_0 = arith.constant 0 : i32
    %c0_i32_1 = arith.constant 0 : i32
    return %c0_i32, %c0_i32_0 : i32, i32
  }
  func.func @transform_10(%arg0: i32, %arg1: i32) -> (i32, i32) {
    %c0_i32 = arith.constant 0 : i32
    %c0_i32_0 = arith.constant 0 : i32
    %c0_i32_1 = arith.constant 0 : i32
    return %c0_i32, %c0_i32_0 : i32, i32
  }
  func.func @transform_11(%arg0: i32, %arg1: i32) -> (i32, i32) {
    %c0_i32 = arith.constant 0 : i32
    %c0_i32_0 = arith.constant 0 : i32
    %c0_i32_1 = arith.constant 0 : i32
    return %c0_i32, %c0_i32_0 : i32, i32
  }
  func.func @transform_12(%arg0: i32, %arg1: i32) -> (i32, i32, i32) {
    %c0_i32 = arith.constant 0 : i32
    %c0_i32_0 = arith.constant 0 : i32
    return %arg0, %arg1, %c0_i32 : i32, i32, i32
  }
}

</mosaic_0001>

<bundles_post_ra>
// kernel: multilayer_s5_forward.3
= control target key start
LH: loop header
LB: loop body
LE: loop exit
PB: predicated region body
PF: predicated region fallthrough
CT: control target
= control target key end

     0   :  { %17 = vsyncpa [#allocation5], 0  ;;  %s2116_s0 = inlined_call_operand.vmem [shape: f32[2,32,32], index: 0, kind: input, shape index: {}]   ;;  %s2117_s1 = inlined_call_operand.vmem [shape: f32[1,32], index: 1, kind: input, shape index: {}]   ;;  %s2118_s2 = inlined_call_operand.vmem [shape: f32[1,32], index: 2, kind: input, shape index: {}]   ;;  %s2119_s3 = inlined_call_operand.vmem [shape: f32[1,128], index: 3, kind: input, shape index: {}]   ;;  %s2120_s4 = inlined_call_operand.vmem [shape: f32[1,128], index: 4, kind: input, shape index: {}]   ;;  %s2121_s5 = inlined_call_operand.vmem [shape: bf16[256,32], index: 5, kind: input, shape index: {}]   ;;  %s2122_s6 = inlined_call_operand.vmem [shape: bf16[32,256], index: 6, kind: input, shape index: {}]   ;;  %s2123_s7 = inlined_call_operand.vmem [shape: f32[1,32], index: 7, kind: input, shape index: {}]   ;;  %s2124_s8 = inlined_call_operand.vmem [shape: f32[1,32], index: 8, kind: input, shape index: {}]   ;;  %s2125_s9 = inlined_call_operand.vmem [shape: f32[1,32], index: 9, kind: input, shape index: {}]   ;;  %s2126_s10 = inlined_call_operand.vmem [shape: bf16[64,32], index: 10, kind: input, shape index: {}]   ;;  %s2127_s11 = inlined_call_operand.vmem [shape: bf16[32,32], index: 11, kind: input, shape index: {}]   ;;  %s2128_s12 = inlined_call_operand.hbm [shape: f32[2,32,32], index: 12, kind: output, shape index: {}]  }
   0x1   :  { %19 = vsyncpa [#allocation5 + $0x1], 0  ;;  %s1763_s21 = smov 0   ;;  %s1765_s22 = smov 0  }
   0x2   :  { %s1767_s23 = smov 0   ;;  %s1769_s24 = smov 0  }
   0x3   :  { %s1771_s25 = smov 0   ;;  %s1773_s26 = smov 0  }
   0x4   :  { %s1775_s27 = smov 0   ;;  %s1777_s28 = smov 0  }
   0x5 LB: > { %2135 = sst [smem:[#allocation7_spill]] %s1669_s23  ;;  %s1376_s29 = sadd.s32 4294967295, %s1689_s28   ;;  %s1689_s28 = sphi %s1777_s28, %s25_s28   ;;  %s1685_s27 = sphi %s1775_s27, %s2151_s27   ;;  %s1681_s26 = sphi %s1773_s26, %s2150_s26   ;;  %s1677_s25 = sphi %s1771_s25, %s2149_s25   ;;  %s1673_s24 = sphi %s1769_s24, %s2148_s24   ;;  %s1669_s23 = sphi %s1767_s23, %s2154_s23   ;;  %s1665_s22 = sphi %s1765_s22, %s2153_s22   ;;  %s1661_s21 = sphi %s1763_s21, %s2152_s21  }
   0x6   : > { %2136 = sst [smem:[#allocation8_spill]] %s1681_s26  ;;  %s1377_s30 = sadd.s32 4294967294, %s1689_s28  }
   0x7   : > { %2137 = sst [smem:[#allocation9_spill]] %s1685_s27  ;;  %s34_s13 = sadd.s32 1, %s1681_s26 }
   0x8   : > { %p35_p0 = scmp.ge.s32.totalorder %s34_s13, 4  ;;  %s37_s14 = sadd.s32 1, %s1685_s27 }
   0x9   : > { %p315_p1 = scmp.ne.s32.totalorder %s1669_s23, %s1665_s22  ;;  %p316_p2 = scmp.eq.s32.totalorder %s1376_s29, 7 }
   0xa   : > { %s2156_s13 = smov (%p35_p0, %s34_s13), 0  ;;  %s2158_s14 = smov (!%p35_p0, %s37_s14), %s1685_s27 }
   0xb   : > { %2138 = sst [smem:[#allocation10_spill]] %s2156_s13  ;;  %s301_s15 = ssub.s32 %s1681_s26, %s2156_s13 }
   0xc   : > { %p1814_p3 = por %p316_p2, %p315_p1  ;;  %p39_p4 = scmp.ge.s32.totalorder %s2158_s14, 2 }
   0xd   : > { %p321_p5 = scmp.ne.s32.totalorder %s1665_s22, %s1661_s21  ;;  %p322_p6 = scmp.eq.s32.totalorder %s1377_s30, 7 }
   0xe   : > { %p1380_p7 = scmp.ge.s32.totalorder %s1689_s28, 1  ;;  %s2160_s14 = smov (%p39_p4, %s2158_s14), 0 }
   0xf   : > { %2140 = sst [smem:[#allocation11_spill]] %s2160_s14  ;;  %p1823_p8 = por %p322_p6, %p321_p5 }
  0x10   : > { %p384_p9 = scmp.lt.s32.totalorder %s1689_s28, 9  ;;  %s300_s18 = ssub.s32 %s1685_s27, %s2160_s14 }
  0x11   : > { %s305_s19 = sadd.s32 1, %s1669_s23  ;;  %s302_s20 = sor.u32 %s301_s15, %s300_s18 }
  0x12   : > { %p385_p10 = pnand %p1380_p7, %p384_p9  ;;  %p303_p11 = scmp.eq.s32.totalorder %s302_s20, 0 }
  0x13   : > { %s2134_s30 = sand.u32 (!%p385_p10), 1, %s1665_s22   ;;  %p429_p12 = scmp.lt.s32.totalorder (!%p385_p10), %s1677_s25, 1 }
  0x14   : > { %s1832_s29 = scalar_select %p303_p11, %s1669_s23, %s305_s19  }
  0x15   : > { %388 = sbr.rel (%p385_p10) target bundleno = 1803 (0x70b), region = 68  ;;  %s1838_s13 = sshll.u32 (!%p385_p10), %s2134_s30, 3 }
  0x16   : > { %2142 = sst [smem:[#allocation12_spill]] %s1832_s29  ;;  %p431_p13 = scmp.lt.s32.totalorder (!%p385_p10), %s1673_s24, 3 }
  0x17   : > { %p1384_p0 = scmp.ne.s32.totalorder (!%p385_p10), %s1673_s24, 0 }
  0x1c   : > { %s430_s14 = scalar_select %p429_p12, %s1677_s25, 1 }
  0x1d   : > { %s432_s15 = scalar_select %p431_p13, %s1673_s24, 3 }
  0x1e   : > { %s1382_s18 = sshll.u32 %s430_s14, 2  ;;  %441 = sbr.rel (%p1384_p0) target bundleno = 37 (0x25), region = 72  ;;  %v1691_v0 = vmov (!%p1384_p0), 0.0  }
  0x1f   : > { %s434_s20 = sadd.s32 %s1382_s18, %s432_s15  ;;  %442 = vst [vmem:[#allocation2] sm:$0x1] (!%p1384_p0), %v1691_v0  ;;  %443 = vst [vmem:[#allocation3] sm:$0x1] (!%p1384_p0), %v1691_v0 }
  0x20   : > { %s1383_s19 = sshll.u32 %s434_s20, 3 }
  0x21   : > { %s436_s29 = scalar_lea.vmem %s2116_s0, %s1383_s19 }
  0x25 PF: > { %v444_v1 = vld [vmem:[%s436_s29] sm:$0xff]  ;;  %vm447_vm0 = vcmask 261120   ;;  %v1557_v5 = vld [vmem:[%s2121_s5 + $0x48] sm:$0xff]   ;;  %v1559_v9 = vld [vmem:[%s2121_s5 + $0x50] sm:$0xff]   ;;  %v1692_v47 = vmov 1966171168   ;;  %v700_v49 = vlaneseq }
  0x26   : > { %v448_v2 = vsel %vm447_vm0, %v444_v1, 0.0  ;;  %v1555_v3 = vld [vmem:[%s2121_s5 + $0x40] sm:$0xff]   ;;  %v1558_v7 = vld [vmem:[%s2121_s5 + $0x8] sm:$0xff]   ;;  %v1560_v10 = vld [vmem:[%s2121_s5 + $0x10] sm:$0xff]   ;;  %v698_v48 = vunpack.c.l.s4 %v1692_v47  ;;  %vm907_vm1 = vcmask 1040384   ;;  %vm909_vm2 = vcmask 1041408  }
  0x27   : > { %449 = vadd.xlane.f32.xlu0 %v448_v2  ;;  %v1556_v4 = vld [vmem:[%s2121_s5] sm:$0xff]   ;;  %1470 = vmatprep.subr.msk.bf16.mxu0 %vm447_vm0, %v1555_v3  ;;  %v596_v8 = vsel %vm447_vm0, %v1558_v7, 0  ;;  %v599_v11 = vsel %vm447_vm0, %v1560_v10, 0  ;;  %v1561_v12 = vld [vmem:[%s2121_s5 + $0x58] sm:$0xff]   ;;  %v1565_v23 = vld [vmem:[%s2121_s5 + $0x68] sm:$0xff]   ;;  %v701_v56 = vshrl.u32 %v700_v49, 7 }
  0x28   : > { %v593_v6 = vsel %vm447_vm0, %v1556_v4, 0  ;;  %v1562_v13 = vld [vmem:[%s2121_s5 + $0x18] sm:$0xff]   ;;  %v1563_v15 = vld [vmem:[%s2121_s5 + $0x60] sm:$0xff]   ;;  %v1566_v24 = vld [vmem:[%s2121_s5 + $0x28] sm:$0xff]   ;;  %v699_v55 = vunpack.c.0.s8 %v698_v48  ;;  %vm911_vm3 = vcmask 1042432   ;;  %vm913_vm4 = vcmask 1043456  }
  0x29   : > { %1425 = vmatpush3.bf16.xpose.msra.mxu0 %v593_v6  ;;  %v602_v14 = vsel %vm447_vm0, %v1562_v13, 0  ;;  %v1564_v16 = vld [vmem:[%s2121_s5 + $0x20] sm:$0xff]   ;;  %v608_v25 = vsel %vm447_vm0, %v1566_v24, 0  ;;  %v1567_v26 = vld [vmem:[%s2121_s5 + $0x70] sm:$0xff]   ;;  %v1569_v29 = vld [vmem:[%s2121_s5 + $0x78] sm:$0xff]   ;;  %vm915_vm5 = vcmask 1044480  }
  0x2a   : > { %1471 = vmatprep.subr.msk.bf16.mxu0 %vm447_vm0, %v1557_v5  ;;  %v605_v17 = vsel %vm447_vm0, %v1564_v16, 0  ;;  %v1568_v27 = vld [vmem:[%s2121_s5 + $0x30] sm:$0xff]   ;;  %v1570_v30 = vld [vmem:[%s2121_s5 + $0x38] sm:$0xff]   ;;  %v1385_v36 = vld [vmem:[%s2117_s1] ss:$0 sm:$0xff]  ;;  %v1952_v60 = vsub.s32 %v699_v55, %v701_v56  ;;  %vm917_vm6 = vcmask 1045504  }
  0x2b   : > { %v611_v28 = vsel %vm447_vm0, %v1568_v27, 0  ;;  %v614_v31 = vsel %vm447_vm0, %v1570_v30, 0  ;;  %v1386_v38 = vld [vmem:[%s2118_s2] ss:$0 sm:$0xff]  ;;  %v1571_v42 = vld [vmem:[%s2122_s6 + $0x4] ss:$8 sps:$4 sm:$0xff]  }
  0x2c   : > { %v1573_v43 = vld [vmem:[%s2122_s6] ss:$8 sps:$4 sm:$0xff]   ;;  %v1574_v44 = vld [vmem:[%s2122_s6 + $0x14] ss:$8 sps:$4 sm:$0xff]   ;;  %996 = vmatprep.subr.bf16.mxu1 %v1571_v42  ;;  %v1576_v45 = vld [vmem:[%s2122_s6 + $0x10] ss:$8 sps:$4 sm:$0xff]  }
  0x2d   : > { %997 = vmatpush1.bf16.xpose.msra.mxu1 %v1573_v43  ;;  %v1941_v46 = vld [vmem:[%s2119_s3] sm:$0x1]  ;;  %v684_v52 = vld [vmem:[#allocation3] sm:$0x1]  ;;  %vm919_vm7 = vcmask 1046528   ;;  %vm1695_vm9 = vmmov 0  }
  0x2e   : > { %998 = vmatprep.subr.bf16.mxu1 %v1574_v44  ;;  %v1946_v50 = vld [vmem:[%s2120_s4] sm:$0x1]  ;;  %v689_v57 = vmul.f32 %v684_v52, %v1941_v46  ;;  %s1696_s27 = smov 96   ;;  %s1420_s20 = sshll.u32 %s1677_s25, 2 }
  0x2f   : > { %v683_v51 = vld [vmem:[#allocation2] sm:$0x1]  ;;  %v686_v54 = vmul.f32 %v684_v52, %v1946_v50  ;;  %s1294_s23 = sadd.s32 %s1673_s24, %s1420_s20  ;;  %s2143_s29 = scalar_lea.vmem [#allocation4], %s1838_s13 }
  0x30   : > { %v685_v53 = vmul.f32 %v683_v51, %v1941_v46  ;;  %v690_v58 = vmul.f32 %v683_v51, %v1946_v50  ;;  %s1421_s30 = sshll.u32 %s1294_s23, 7  ;;  %s1298_s19 = sshll.u32 %s2143_s29, 4  ;;  %s2060_s19 = int_to_ptr.vmem [resolvable:$true] %s1298_s19 }
  0x31   : > { %1427 = vmatpush3.bf16.xpose.msra.mxu0 %v596_v8  ;;  %s2058_s18 = scalar_lea.hbm %s2128_s12, %s1421_s30  ;;  %s2144_s25 = smov %s2143_s29 }
  0x32   : > { %1472 = vmatprep.subr.msk.bf16.mxu0 %vm447_vm0, %v1559_v9  ;;  %v687_v59 = vsub.f32 %v685_v53, %v686_v54  ;;  %v691_v61 = vadd.f32 %v690_v58, %v689_v57  ;;  %s2145_s24 = sand.u32 1, %s1665_s22   ;;  %s1697_s20 = smov [#allocation4]  }
  0x33   : > { %s1283_s26 = scalar_lea.sflag [#allocation5], %s2145_s24  ;;  %s1599_s23 = sshll.u32 %s1697_s20, 4  ;;  %s1600_s23 = int_to_ptr.vmem [resolvable:$false] %s1599_s23 }
  0x34   : > { %s1601_s30 = scalar_lea.vmem %s1600_s23, 256  ;;  %p1602_p5 = scmp.lt.s32.totalorder %s2060_s19, %s1600_s23 }
  0x35   : > { %999 = vmatpush1.bf16.xpose.msra.mxu1 %v1576_v45 }
  0x39   : > { %1429 = vmatpush3.bf16.xpose.msra.mxu0 %v599_v11 }
  0x3a   : > { %1473 = vmatprep.subr.msk.bf16.mxu0 %vm447_vm0, %v1561_v12 }
  0x41   : > { %1431 = vmatpush3.bf16.xpose.msra.mxu0 %v602_v14 }
  0x42   : > { %1474 = vmatprep.subr.msk.bf16.mxu0 %vm447_vm0, %v1563_v15  ;;  %v1961_v15 = vsub.s32 0, %v701_v56 }
  0x49   : > { %1433 = vmatpush3.bf16.xpose.msra.mxu0 %v605_v17 }
  0x4a   : > { %1475 = vmatprep.subr.msk.bf16.mxu0 %vm447_vm0, %v1565_v23 }
  0x51   : > { %1435 = vmatpush3.bf16.xpose.msra.mxu0 %v608_v25 }
  0x52   : > { %1476 = vmatprep.subr.msk.bf16.mxu0 %vm447_vm0, %v1567_v26 }
  0x59   : > { %1437 = vmatpush3.bf16.xpose.msra.mxu0 %v611_v28 }
  0x5a   : > { %1477 = vmatprep.subr.msk.bf16.mxu0 %vm447_vm0, %v1569_v29 }
  0x61   : > { %1439 = vmatpush3.bf16.xpose.msra.mxu0 %v614_v31 }
  0xb4   : > { %v450_v18 = vpop.xlane.xlu0 %449 }
  0xb5   : > { %v452_v19 = vmul.f32 0.03125, %v450_v18 }
  0xb7   : > { %v453_v20 = vsub.f32 %v444_v1, %v452_v19 }
  0xb9   : > { %v454_v21 = vmul.f32 %v453_v20, %v453_v20 }
  0xbb   : > { %v455_v22 = vsel %vm447_vm0, %v454_v21, 0.0 }
  0xbc   : > { %456 = vadd.xlane.f32.xlu0 %v455_v22 }
 0x149   : > { %v457_v32 = vpop.xlane.xlu0 %456 }
 0x14a   : > { %v458_v33 = vmul.f32 0.03125, %v457_v32 }
 0x14c   : > { %v459_v34 = vadd.f32 1e-05, %v458_v33 }
 0x14e   : > { %1583 = vrsqrt.f32 %v459_v34 }
 0x158   : > { %v1584_v35 = vpop.eup %1583 }
 0x159   : > { %v461_v37 = vmul.f32 %v1584_v35, %v453_v20 }
 0x15b   : > { %v468_v39 = vmul.f32 %v1385_v36, %v461_v37 }
 0x15d   : > { %v1920_v40 = vadd.f32 %v1386_v38, %v468_v39 }
 0x15f   : > { %v476_v41 = vpack.c.bf16 %v1920_v40, %v1920_v40 }
 0x161   : > { %1440 = vmatprep.mubr.msk.bf16.mxu0 %vm447_vm0, %v476_v41 }
 0x162   : > { %1441 = vmatmul.mubr.msk.bf16.vlgmr.msra.gmra.mrb[0].mxu0 %vm447_vm0, %v476_v41 }
 0x235   : > { %v674_v62 = vpop.f32.mrb[0].mxu0 }
 0x236   : > { %v688_v63 = vadd.f32 %v687_v59, %v674_v62  ;;  %v703_v0 = vrot.slane %v674_v62, %v1952_v60  ;;  %v676_v1 = vpop.f32.mrb[1].mxu0  ;;  %v776_v35 = vcombine.high %v674_v62, %v674_v62 }
 0x237   : > { %v692_v2 = vadd.f32 %v691_v61, %v676_v1  ;;  %v731_v3 = vrot.slane %v676_v1, %v1952_v60  ;;  %v678_v4 = vpop.f32.mrb[2].mxu0  ;;  %v796_v36 = vcombine.high %v676_v1, %v676_v1 }
 0x238   : > { %v693_v5 = vmul.f32 %v688_v63, %v1941_v46  ;;  %v704_v6 = vcombine.high %v703_v0, %v703_v0  ;;  %v722_v7 = vmul.f32 %v688_v63, %v1946_v50  ;;  %v679_v8 = vpop.f32.mrb[3].mxu0  ;;  %v711_v17 = vrot.slane %v703_v0, %v1952_v60 }
 0x239   : > { %v694_v9 = vmul.f32 %v692_v2, %v1946_v50  ;;  %v721_v10 = vmul.f32 %v692_v2, %v1941_v46  ;;  %v732_v11 = vcombine.high %v731_v3, %v731_v3  ;;  %v739_v19 = vrot.slane %v731_v3, %v1952_v60 }
 0x23a   : > { %v718_v12 = vrot.slane %v704_v6, %v1952_v60  ;;  %v752_v27 = vcombine.high %v711_v17, %v711_v17  ;;  %v783_v52 = vrot.slane %v776_v35, %v1952_v60  ;;  %v803_v55 = vrot.slane %v796_v36, %v1952_v60 }
 0x23b   : > { %v695_v13 = vsub.f32 %v693_v5, %v694_v9  ;;  %v723_v14 = vadd.f32 %v722_v7, %v721_v10  ;;  %v746_v16 = vrot.slane %v732_v11, %v1952_v60  ;;  %v758_v28 = vcombine.high %v739_v19, %v739_v19 }
 0x23c   : > { %v764_v44 = vcombine.high %v718_v12, %v718_v12  ;;  %v816_v5 = vcombine.high %v783_v52, %v783_v52  ;;  %v829_v8 = vcombine.high %v803_v55, %v803_v55 }
 0x23d   : > { %v720_v18 = vadd.f32 %v718_v12, %v695_v13  ;;  %v748_v20 = vadd.f32 %v746_v16, %v723_v14  ;;  %v770_v48 = vcombine.high %v746_v16, %v746_v16 }
 0x23e   : > { %v823_v16 = vrot.slane %v816_v5, %v1952_v60  ;;  %v836_v19 = vrot.slane %v829_v8, %v1952_v60 }
 0x23f   : > { %v749_v21 = vmul.f32 %v720_v18, %v1941_v46  ;;  %v756_v22 = vmul.f32 %v720_v18, %v1946_v50  ;;  %v750_v23 = vmul.f32 %v748_v20, %v1946_v50  ;;  %v755_v24 = vmul.f32 %v748_v20, %v1941_v46 }
 0x240   : > { %v869_v25 = vrot.slane %v720_v18, %v1961_v15  ;;  %v925_v26 = vrot.slane %v748_v20, %v1961_v15 }
 0x241   : > { %v751_v29 = vsub.f32 %v749_v21, %v750_v23  ;;  %v757_v30 = vadd.f32 %v756_v22, %v755_v24 }
 0x242   : > { %v908_v31 = vsel %vm907_vm1, %v688_v63, %v869_v25  ;;  %v963_v32 = vsel %vm907_vm1, %v692_v2, %v925_v26  ;;  %v790_v63 = vrot.slane %v783_v52, %v1952_v60  ;;  %v810_v2 = vrot.slane %v803_v55, %v1952_v60 }
 0x243   : > { %v754_v33 = vadd.f32 %v752_v27, %v751_v29  ;;  %v760_v34 = vadd.f32 %v758_v28, %v757_v30 }
 0x244   : > { %v842_v30 = vcombine.high %v790_v63, %v790_v63 }
 0x245   : > { %v761_v37 = vmul.f32 %v754_v33, %v1941_v46  ;;  %v762_v38 = vmul.f32 %v760_v34, %v1946_v50  ;;  %v767_v39 = vmul.f32 %v760_v34, %v1941_v46  ;;  %v768_v41 = vmul.f32 %v754_v33, %v1946_v50 }
 0x246   : > { %v875_v42 = vrot.slane %v754_v33, %v1961_v15  ;;  %v931_v43 = vrot.slane %v760_v34, %v1961_v15 }
 0x247   : > { %v763_v45 = vsub.f32 %v761_v37, %v762_v38  ;;  %v769_v47 = vadd.f32 %v768_v41, %v767_v39 }
 0x248   : > { %v910_v49 = vsel %vm909_vm2, %v908_v31, %v875_v42  ;;  %v964_v51 = vsel %vm909_vm2, %v963_v32, %v931_v43  ;;  %v848_v31 = vcombine.high %v810_v2, %v810_v2 }
 0x249   : > { %v766_v53 = vadd.f32 %v764_v44, %v763_v45  ;;  %v772_v54 = vadd.f32 %v770_v48, %v769_v47  ;;  %v860_v45 = vcombine.high %v836_v19, %v836_v19  ;;  %v854_v48 = vcombine.high %v823_v16, %v823_v16 }
 0x24b   : > { %v773_v56 = vmul.f32 %v766_v53, %v1941_v46  ;;  %v774_v57 = vmul.f32 %v772_v54, %v1946_v50  ;;  %v793_v58 = vmul.f32 %v772_v54, %v1941_v46  ;;  %v794_v59 = vmul.f32 %v766_v53, %v1946_v50 }
 0x24c   : > { %v937_v61 = vrot.slane %v772_v54, %v1961_v15  ;;  %v881_v62 = vrot.slane %v766_v53, %v1961_v15 }
 0x24d   : > { %v775_v0 = vsub.f32 %v773_v56, %v774_v57  ;;  %v795_v1 = vadd.f32 %v794_v59, %v793_v58  ;;  %v1408_v58 = vld [vmem:[%s2123_s7] ss:$0 sm:$0xff] }
 0x24e   : > { %v965_v3 = vsel %vm911_vm3, %v964_v51, %v937_v61  ;;  %v912_v4 = vsel %vm911_vm3, %v910_v49, %v881_v62  ;;  %v1044_v62 = vmul.f32 %v1408_v58, %v1920_v40 }
 0x24f   : > { %v792_v6 = vadd.f32 %v790_v63, %v775_v0  ;;  %v812_v7 = vadd.f32 %v810_v2, %v795_v1 }
 0x251   : > { %v813_v9 = vmul.f32 %v792_v6, %v1941_v46  ;;  %v814_v10 = vmul.f32 %v812_v7, %v1946_v50  ;;  %v826_v11 = vmul.f32 %v812_v7, %v1941_v46  ;;  %v827_v12 = vmul.f32 %v792_v6, %v1946_v50 }
 0x252   : > { %v943_v13 = vrot.slane %v812_v7, %v1961_v15  ;;  %v887_v14 = vrot.slane %v792_v6, %v1961_v15 }
 0x253   : > { %v815_v17 = vsub.f32 %v813_v9, %v814_v10  ;;  %v828_v18 = vadd.f32 %v827_v12, %v826_v11 }
 0x254   : > { %v966_v20 = vsel %vm913_vm4, %v965_v3, %v943_v13  ;;  %v914_v21 = vsel %vm913_vm4, %v912_v4, %v887_v14 }
 0x255   : > { %v825_v22 = vadd.f32 %v823_v16, %v815_v17  ;;  %v838_v23 = vadd.f32 %v836_v19, %v828_v18 }
 0x257   : > { %v840_v24 = vmul.f32 %v838_v23, %v1946_v50  ;;  %v839_v25 = vmul.f32 %v825_v22, %v1941_v46  ;;  %v845_v26 = vmul.f32 %v838_v23, %v1941_v46  ;;  %v846_v27 = vmul.f32 %v825_v22, %v1946_v50 }
 0x258   : > { %v949_v28 = vrot.slane %v838_v23, %v1961_v15  ;;  %v893_v29 = vrot.slane %v825_v22, %v1961_v15  ;;  %v1693_v23 = vmov -1.0  }
 0x259   : > { %v841_v60 = vsub.f32 %v839_v25, %v840_v24  ;;  %v847_v32 = vadd.f32 %v846_v27, %v845_v26 }
 0x25a   : > { %v967_v33 = vsel %vm915_vm5, %v966_v20, %v949_v28  ;;  %v916_v34 = vsel %vm915_vm5, %v914_v21, %v893_v29 }
 0x25b   : > { %v844_v35 = vadd.f32 %v842_v30, %v841_v60  ;;  %v850_v36 = vadd.f32 %v848_v31, %v847_v32  ;;  %v1577_v31 = vld [vmem:[%s2126_s10] sm:$0xff]   ;;  %v1694_v60 = vmov 0.0  }
 0x25c   : > { %1450 = vmatprep.subr.bf16.mxu1 %v1694_v60  ;;  %v1135_v32 = vsel %vm447_vm0, %v1577_v31, 0 }
 0x25d   : > { %v857_v37 = vmul.f32 %v850_v36, %v1941_v46  ;;  %v858_v38 = vmul.f32 %v844_v35, %v1946_v50  ;;  %v955_v39 = vrot.slane %v850_v36, %v1961_v15  ;;  %v851_v41 = vmul.f32 %v844_v35, %v1941_v46 }
 0x25e   : > { %v852_v42 = vmul.f32 %v850_v36, %v1946_v50  ;;  %v899_v43 = vrot.slane %v844_v35, %v1961_v15 }
 0x25f   : > { %v859_v44 = vadd.f32 %v858_v38, %v857_v37  ;;  %v968_v47 = vsel %vm917_vm6, %v967_v33, %v955_v39  ;;  %v1579_v39 = vld [vmem:[%s2126_s10 + $0x10] sm:$0xff]  }
 0x260   : > { %v853_v49 = vsub.f32 %v851_v41, %v852_v42  ;;  %v918_v51 = vsel %vm917_vm6, %v916_v34, %v899_v43  ;;  %v1141_v41 = vsel %vm447_vm0, %v1579_v39, 0  ;;  %v1580_v42 = vld [vmem:[%s2126_s10 + $0x18] sm:$0xff]  }
 0x261   : > { %v862_v52 = vadd.f32 %v860_v45, %v859_v44  ;;  %v1144_v43 = vsel %vm447_vm0, %v1580_v42, 0 }
 0x262   : > { %v856_v53 = vadd.f32 %v854_v48, %v853_v49  ;;  %v1409_v49 = vld [vmem:[%s2124_s8] ss:$0 sm:$0xff] }
 0x263   : > { %864 = vst [vmem:[#allocation3] sm:$0x1] %v862_v52  ;;  %v961_v54 = vrot.slane %v862_v52, %v1961_v15  ;;  %v1410_v52 = vld [vmem:[%s2125_s9] ss:$0 sm:$0xff] }
 0x264   : > { %863 = vst [vmem:[#allocation2] sm:$0x1] %v856_v53  ;;  %v905_v55 = vrot.slane %v856_v53, %v1961_v15 }
 0x265   : > { %v969_v46 = vsel %vm919_vm7, %v968_v47, %v961_v54 }
 0x266   : > { %v971_v56 = vpack.c.bf16 %v969_v46, %v969_v46  ;;  %v920_v50 = vsel %vm919_vm7, %v918_v51, %v905_v55  ;;  %v1581_v46 = vld [vmem:[%s2127_s11] sm:$0xff]  }
 0x267   : > { %v970_v57 = vpack.c.bf16 %v920_v50, %v920_v50  ;;  %v1582_v50 = vld [vmem:[%s2127_s11 + $0x8] sm:$0xff]  }
 0x268   : > { %1028 = vmatprep.mubr.bf16.mxu1 %v971_v56  ;;  %v1236_v56 = vsel %vm447_vm0, %v1581_v46, 0 }
 0x269   : > { %1029 = vmatmul.mubr.bf16.vlgmr.msra.gmra.mrb[0].mxu1 %v970_v57  ;;  %v1239_v57 = vsel %vm447_vm0, %v1582_v50, 0 }
 0x26a   : > { %1451 = vmatpush3.bf16.xpose.msra.mxu1 %v1135_v32  ;;  %1458 = vmatprep.mubr.msk.bf16.mxu1 %vm1695_vm9, %v1694_v60 }
 0x26b   : > { %1452 = vmatprep.subr.bf16.mxu1 %v1694_v60 }
 0x33c   : > { %v1030_v59 = vpop.f32.mrb[0].mxu1 }
 0x33d   : > { %v1036_v61 = vmul.f32 2.0, %v1030_v59  ;;  %v1032_v63 = vpop.f32.mrb[1].mxu1 }
 0x33e   : > { %v1033_v0 = vpop.f32.mrb[2].mxu1 }
 0x33f   : > { %v1045_v1 = vadd.f32 %v1044_v62, %v1036_v61  ;;  %v1034_v2 = vpop.f32.mrb[3].mxu1 }
 0x341   : > { %v1047_v3 = vmul.f32 0.70710677, %v1045_v1  ;;  %v1046_v26 = vmul.f32 0.5, %v1045_v1 }
 0x343   : > { %v1050_v15 = vand.u32 2147483647, %v1047_v3  ;;  %vm1048_vm8 = vcmp.ge.f32.partialorder %v1047_v3, 0.0 }
 0x344   : > { %v1049_v24 = vsel %vm1048_vm8, 1.0, %v1693_v23 }
 0x345   : > { %v1051_v4 = vmul.f32 0.3275911, %v1050_v15  ;;  %v1063_v6 = vsub.f32 0.0, %v1050_v15 }
 0x347   : > { %v1052_v5 = vadd.f32 1.0, %v1051_v4  ;;  %v1064_v8 = vmul.f32 %v1063_v6, %v1050_v15 }
 0x349   : > { %1585 = vrcp.f32 %v1052_v5  ;;  %v1065_v11 = vmul.f32 1.442695, %v1064_v8 }
 0x34b   : > { %1587 = vpow2.f32 %v1065_v11 }
 0x353   : > { %v1586_v7 = vpop.eup %1585 }
 0x354   : > { %v1054_v9 = vmul.f32 1.0614054, %v1586_v7 }
 0x355   : > { %v1588_v20 = vpop.eup %1587 }
 0x356   : > { %v1055_v10 = vadd.f32 -1.4531521, %v1054_v9 }
 0x358   : > { %v1056_v12 = vmul.f32 %v1586_v7, %v1055_v10 }
 0x35a   : > { %v1057_v13 = vadd.f32 1.4214138, %v1056_v12 }
 0x35c   : > { %v1058_v14 = vmul.f32 %v1586_v7, %v1057_v13 }
 0x35e   : > { %v1059_v16 = vadd.f32 -0.28449672, %v1058_v14 }
 0x360   : > { %v1060_v17 = vmul.f32 %v1586_v7, %v1059_v16 }
 0x362   : > { %v1061_v18 = vadd.f32 0.2548296, %v1060_v17 }
 0x364   : > { %v1062_v19 = vmul.f32 %v1586_v7, %v1061_v18 }
 0x366   : > { %v1067_v21 = vmul.f32 %v1588_v20, %v1062_v19 }
 0x368   : > { %v1068_v22 = vsub.f32 1.0, %v1067_v21 }
 0x36a   : > { %v1069_v25 = vmul.f32 %v1068_v22, %v1049_v24 }
 0x36c   : > { %v1070_v27 = vadd.f32 1.0, %v1069_v25 }
 0x36e   : > { %v1071_v28 = vmul.f32 %v1070_v27, %v1046_v26 }
 0x370   : > { %v1072_v29 = vadd.f32 %v1071_v28, %v1920_v40  ;;  %v1578_v40 = vld [vmem:[%s2126_s10 + $0x8] sm:$0xff]  }
 0x371   : > { %v1138_v38 = vsel %vm447_vm0, %v1578_v40, 0 }
 0x372   : > { %v1075_v30 = vsel %vm447_vm0, %v1072_v29, 0.0  ;;  %1453 = vmatpush3.bf16.xpose.msra.mxu1 %v1138_v38 }
 0x373   : > { %1076 = vadd.xlane.f32.xlu1 %v1075_v30  ;;  %1454 = vmatprep.subr.bf16.mxu1 %v1694_v60 }
 0x37a   : > { %1455 = vmatpush3.bf16.xpose.msra.mxu1 %v1141_v41 }
 0x37b   : > { %1456 = vmatprep.subr.bf16.mxu1 %v1694_v60 }
 0x382   : > { %1457 = vmatpush3.bf16.xpose.msra.mxu1 %v1144_v43 }
 0x383   : > { %1462 = vmatprep.subr.bf16.mxu1 %v1694_v60 }
 0x400   : > { %v1077_v33 = vpop.xlane.xlu1 %1076 }
 0x401   : > { %v1078_v34 = vmul.f32 0.03125, %v1077_v33 }
 0x403   : > { %v1079_v35 = vsub.f32 %v1072_v29, %v1078_v34 }
 0x405   : > { %v1080_v36 = vmul.f32 %v1079_v35, %v1079_v35 }
 0x407   : > { %v1081_v37 = vsel %vm447_vm0, %v1080_v36, 0.0 }
 0x408   : > { %1082 = vadd.xlane.f32.xlu1 %v1081_v37 }
 0x495   : > { %v1083_v44 = vpop.xlane.xlu1 %1082 }
 0x496   : > { %v1084_v45 = vmul.f32 0.03125, %v1083_v44 }
 0x498   : > { %v1085_v47 = vadd.f32 1e-05, %v1084_v45 }
 0x49a   : > { %1589 = vrsqrt.f32 %v1085_v47 }
 0x4a4   : > { %v1590_v48 = vpop.eup %1589 }
 0x4a5   : > { %v1087_v51 = vmul.f32 %v1590_v48, %v1079_v35 }
 0x4a7   : > { %v1094_v53 = vmul.f32 %v1409_v49, %v1087_v51 }
 0x4a9   : > { %v1101_v54 = vadd.f32 %v1410_v52, %v1094_v53 }
 0x4ab   : > { %v1102_v55 = vpack.c.bf16 %v1101_v54, %v1101_v54 }
 0x4ad   : > { %1459 = vmatmul.mubr.msk.bf16.vlgmr.msra.gmra.mrb[4].mxu1 %vm447_vm0, %v1102_v55 }
 0x4ae   : > { %1466 = vmatprep.mubr.msk.bf16.mxu1 %vm1695_vm9, %v1694_v60  ;;  %1463 = vmatpush3.bf16.xpose.msra.mxu1 %v1236_v56 }
 0x4af   : > { %1464 = vmatprep.subr.bf16.mxu1 %v1694_v60 }
 0x4b6   : > { %1465 = vmatpush3.bf16.xpose.msra.mxu1 %v1239_v57 }
 0x580   : > { %v1180_v58 = vpop.f32.mrb[4].mxu1 }
 0x581   : > { %v1187_v59 = vmul.f32 0.70710677, %v1180_v58  ;;  %v1460_v61 = vpop.f32.mrb[5].mxu1  ;;  %v1186_v21 = vmul.f32 0.5, %v1180_v58 }
 0x582   : > { %v1183_v62 = vpop.f32.mrb[6].mxu1 }
 0x583   : > { %v1190_v63 = vand.u32 2147483647, %v1187_v59  ;;  %v1461_v0 = vpop.f32.mrb[7].mxu1  ;;  %vm1188_vm10 = vcmp.ge.f32.partialorder %v1187_v59, 0.0 }
 0x584   : > { %v1189_v19 = vsel %vm1188_vm10, 1.0, %v1693_v23 }
 0x585   : > { %v1191_v1 = vmul.f32 0.3275911, %v1190_v63  ;;  %v1203_v3 = vsub.f32 0.0, %v1190_v63 }
 0x587   : > { %v1192_v2 = vadd.f32 1.0, %v1191_v1  ;;  %v1204_v4 = vmul.f32 %v1203_v3, %v1190_v63 }
 0x589   : > { %1591 = vrcp.f32 %v1192_v2  ;;  %v1205_v7 = vmul.f32 1.442695, %v1204_v4 }
 0x58b   : > { %1593 = vpow2.f32 %v1205_v7 }
 0x593   : > { %v1592_v15 = vpop.eup %1591 }
 0x594   : > { %v1194_v5 = vmul.f32 1.0614054, %v1592_v15 }
 0x595   : > { %v1594_v16 = vpop.eup %1593 }
 0x596   : > { %v1195_v6 = vadd.f32 -1.4531521, %v1194_v5 }
 0x598   : > { %v1196_v8 = vmul.f32 %v1592_v15, %v1195_v6 }
 0x59a   : > { %v1197_v9 = vadd.f32 1.4214138, %v1196_v8 }
 0x59c   : > { %v1198_v10 = vmul.f32 %v1592_v15, %v1197_v9 }
 0x59e   : > { %v1199_v11 = vadd.f32 -0.28449672, %v1198_v10 }
 0x5a0   : > { %v1200_v12 = vmul.f32 %v1592_v15, %v1199_v11 }
 0x5a2   : > { %v1201_v13 = vadd.f32 0.2548296, %v1200_v12 }
 0x5a4   : > { %v1202_v14 = vmul.f32 %v1592_v15, %v1201_v13 }
 0x5a6   : > { %v1207_v17 = vmul.f32 %v1594_v16, %v1202_v14 }
 0x5a8   : > { %v1208_v18 = vsub.f32 1.0, %v1207_v17 }
 0x5aa   : > { %v1209_v20 = vmul.f32 %v1208_v18, %v1189_v19 }
 0x5ac   : > { %v1210_v22 = vadd.f32 1.0, %v1209_v20 }
 0x5ae   : > { %v1211_v24 = vmul.f32 %v1210_v22, %v1186_v21 }
 0x5b0   : > { %1213 = vrot.lane.b32.xlu0 %v1211_v24, %s1696_s27  ;;  %s1595_s27 = scalar_lea.vmem %s2060_s19, 128 }
 0x5b1   : > { %p1596_p1 = scmp.ne.s32.totalorder %s2060_s19, %s1595_s27  ;;  %p1603_p6 = scmp.lt.s32.totalorder %s1601_s30, %s1595_s27 }
 0x5b3   : > { %p1597_p2 = pnand %p1596_p1, %p1814_p3  ;;  %p1604_p7 = por %p1603_p6, %p1602_p5 }
 0x5b5   : > { %p1598_p4 = pneg %p1597_p2 }
 0x5b7   : > { %p1605_p9 = pnand %p1604_p7, %p1598_p4 }
 0x622   : > { %v1214_v25 = vpop.permute.xlu0 %1213 }
 0x623   : > { %v1216_v26 = vmul.f32 %v1214_v25, %v1180_v58 }
 0x625   : > { %v1217_v27 = vpack.c.bf16 %v1216_v26, %v1216_v26 }
 0x627   : > { %1467 = vmatmul.mubr.msk.bf16.vlgmr.msra.gmra.mrb[8].mxu1 %vm447_vm0, %v1217_v27 }
 0x6fa   : > { %v1275_v23 = vpop.f32.mrb[8].mxu1 }
 0x6fb   : > { %v1276_v28 = vadd.f32 %v1275_v23, %v1101_v54  ;;  %v1468_v29 = vpop.f32.mrb[9].mxu1 }
 0x6fc   : > { %v1278_v30 = vpop.f32.mrb[10].mxu1 }
 0x6fd   : > { %1281 = vst.msk [vmem:[%s2144_s25] sm:$0xff] %vm447_vm0, %v1276_v28  ;;  %v1469_v31 = vpop.f32.mrb[11].mxu1 }
 0x6fe   : > { %1608 = shalt.err (!%p1605_p9)
}
 0x6ff   : > { %s1609_s13 = scalar_lea.hbm %s2058_s18, 128  ;;  %s1613_s15 = scalar_lea.hbm %s2128_s12, 1024 }
 0x700   : > { %p1610_p10 = scmp.ne.s32.totalorder %s2058_s18, %s1609_s13  ;;  %p1614_p13 = scmp.lt.u32.totalorder %s2058_s18, %s2128_s12 }
 0x701   : > { %p1615_p0 = scmp.lt.u32.totalorder %s1613_s15, %s1609_s13  ;;  %p1617_p2 = scmp.lt.u32.totalorder %s1609_s13, %s2058_s18 }
 0x702   : > { %p1611_p11 = pnand %p1610_p10, %p1814_p3 }
 0x703   : > { %p1616_p1 = por %p1615_p0, %p1614_p13 }
 0x704   : > { %p1612_p12 = pneg %p1611_p11 }
 0x705   : > { %p1618_p4 = por %p1617_p2, %p1616_p1 }
 0x707   : > { %p1619_p5 = pnand %p1618_p4, %p1612_p12 }
 0x709   : > { %1622 = shalt.err (!%p1619_p5)
}
 0x70a   : > { %1478 = dma.vmem_to_hbm [thread:$0]  (%p1814_p3), %s2060_s19, 128, %s2058_s18, %s1283_s26  }
 0x70b PF: > { %p1484_p6 = scmp.ge.s32.totalorder %s1689_s28, 2  ;;  %s1310_s27 = sand.u32 1, %s1661_s21  }
 0x70c   : > { %s1311_s20 = scalar_lea.sflag [#allocation5], %s1310_s27 }
 0x70d   : > { %p1481_p7 = pnand %p1484_p6, %p1823_p8 }
 0x70f   : > { %1656 = dma.done.wait (!%p1481_p7), %s1311_s20, 128  }
 0x710   : > { %1658 = vsyncadd (!%p1481_p7), %s1311_s20, 4294967168  ;;  %s25_s28 = sadd.s32 1, %s1689_s28   ;;  %s2146_s23 = sld [smem:[#allocation7_spill]] }
 0x711   : > { %p22_p9 = scmp.ge.s32.totalorder %s25_s28, 10   ;;  %s2147_s16 = sld [smem:[#allocation12_spill]] }
 0x712   : > { %s2148_s24 = sld [smem:[#allocation8_spill]]  ;;  %s2149_s25 = sld [smem:[#allocation9_spill]] }
 0x713   : > { %s2150_s26 = sld [smem:[#allocation10_spill]]  ;;  %s2151_s27 = sld [smem:[#allocation11_spill]] }
 0x714   : > { %s2152_s21 = smov %s1665_s22  ;;  %24 = sbr.rel (!%p22_p9) target bundleno = 5 (0x5), region = 107 }
 0x716   : > { %s2153_s22 = smov %s2146_s23 }
 0x717   : > { %s2154_s23 = smov %s2147_s16 }
 0x71b   :  { %1316 = vsyncpa [#allocation5], 1 }
 0x71c   :  { %1318 = vsyncpa [#allocation5 + $0x1], 1 }

// kernel: multilayer_s5_forward.2
= control target key start
LH: loop header
LB: loop body
LE: loop exit
PB: predicated region body
PF: predicated region fallthrough
CT: control target
= control target key end

     0   :  { %s1673_s21 = smov 0   ;;  %s1675_s22 = smov 0   ;;  %s1931_s0 = inlined_call_operand.vmem [shape: f32[2,32,32], index: 0, kind: input, shape index: {}]   ;;  %s1932_s1 = inlined_call_operand.vmem [shape: f32[1,32], index: 1, kind: input, shape index: {}]   ;;  %s1933_s2 = inlined_call_operand.vmem [shape: f32[1,32], index: 2, kind: input, shape index: {}]   ;;  %s1934_s3 = inlined_call_operand.vmem [shape: f32[1,128], index: 3, kind: input, shape index: {}]   ;;  %s1935_s4 = inlined_call_operand.vmem [shape: f32[1,128], index: 4, kind: input, shape index: {}]   ;;  %s1936_s5 = inlined_call_operand.vmem [shape: bf16[256,32], index: 5, kind: input, shape index: {}]   ;;  %s1937_s6 = inlined_call_operand.vmem [shape: bf16[32,256], index: 6, kind: input, shape index: {}]   ;;  %s1938_s7 = inlined_call_operand.vmem [shape: f32[1,32], index: 7, kind: input, shape index: {}]   ;;  %s1939_s8 = inlined_call_operand.vmem [shape: f32[1,32], index: 8, kind: input, shape index: {}]   ;;  %s1940_s9 = inlined_call_operand.vmem [shape: f32[1,32], index: 9, kind: input, shape index: {}]   ;;  %s1941_s10 = inlined_call_operand.vmem [shape: bf16[64,32], index: 10, kind: input, shape index: {}]   ;;  %s1942_s11 = inlined_call_operand.vmem [shape: bf16[32,32], index: 11, kind: input, shape index: {}]   ;;  %s1943_s12 = inlined_call_operand.vmem [shape: f32[2,32,32], index: 12, kind: output, shape index: {}]  }
   0x1   :  { %s1677_s23 = smov 0   ;;  %s1679_s24 = smov 0  }
   0x2   :  { %s1681_s25 = smov 0  }
   0x3 LB: > { %s31_s26 = sadd.s32 1, %s1592_s23  ;;  %s34_s27 = sadd.s32 1, %s1596_s24  ;;  %s1600_s25 = sphi %s1681_s25, %s22_s25   ;;  %s1596_s24 = sphi %s1679_s24, %s1947_s24   ;;  %s1592_s23 = sphi %s1677_s23, %s1946_s23   ;;  %s1588_s22 = sphi %s1675_s22, %s1945_s22   ;;  %s1584_s21 = sphi %s1673_s21, %s1944_s21  }
   0x4   : > { %p32_p0 = scmp.ge.s32.totalorder %s31_s26, 4  ;;  %p1380_p1 = scmp.ge.s32.totalorder %s1600_s25, 1 }
   0x5   : > { %p381_p2 = scmp.lt.s32.totalorder %s1600_s25, 9 }
   0x6   : > { %s1949_s26 = smov (%p32_p0, %s31_s26), 0  ;;  %s1951_s27 = smov (!%p32_p0, %s34_s27), %s1596_s24 }
   0x7   : > { %p382_p3 = pnand %p1380_p1, %p381_p2  ;;  %p36_p4 = scmp.ge.s32.totalorder %s1951_s27, 2 }
   0x8   : > { %p429_p5 = scmp.lt.s32.totalorder (!%p382_p3), %s1588_s22, 1  ;;  %p431_p6 = scmp.lt.s32.totalorder (!%p382_p3), %s1584_s21, 3 }
   0x9   : > { %s1953_s27 = smov (%p36_p4, %s1951_s27), 0  ;;  %385 = sbr.rel (%p382_p3) target bundleno = 1776 (0x6f0), region = 68 }
   0xa   : > { %p1385_p7 = scmp.ne.s32.totalorder (!%p382_p3), %s1584_s21, 0 }
  0x10   : > { %s1955_s22 = smov (!%p429_p5, %s1588_s22), 1  ;;  %449 = sbr.rel (%p1385_p7) target bundleno = 23 (0x17), region = 72 }
  0x11   : > { %s432_s28 = scalar_select %p431_p6, %s1584_s21, 3 }
  0x12   : > { %s1381_s29 = sshll.u32 %s1955_s22, 2  ;;  %v1602_v0 = vmov (!%p1385_p7), 0.0  }
  0x13   : > { %s434_s30 = sadd.s32 %s1381_s29, %s432_s28  ;;  %450 = vst [vmem:[#allocation2] sm:$0x1] (!%p1385_p7), %v1602_v0  ;;  %451 = vst [vmem:[#allocation3] sm:$0x1] (!%p1385_p7), %v1602_v0 }
  0x14   : > { %s1382_s13 = sshll.u32 %s434_s30, 3 }
  0x15   : > { %s436_s16 = scalar_lea.vmem %s1931_s0, %s1382_s13  ;;  %s1709_s19 = scalar_lea.vmem %s1943_s12, %s1382_s13 }
  0x17 PF: > { %v452_v1 = vld [vmem:[%s436_s16] sm:$0xff]  ;;  %vm455_vm0 = vcmask 261120   ;;  %v1524_v5 = vld [vmem:[%s1936_s5 + $0x48] sm:$0xff]   ;;  %v1526_v9 = vld [vmem:[%s1936_s5 + $0x50] sm:$0xff]   ;;  %v1603_v47 = vmov 1966171168   ;;  %v708_v49 = vlaneseq }
  0x18   : > { %v456_v2 = vsel %vm455_vm0, %v452_v1, 0.0  ;;  %v1522_v3 = vld [vmem:[%s1936_s5 + $0x40] sm:$0xff]   ;;  %v1525_v7 = vld [vmem:[%s1936_s5 + $0x8] sm:$0xff]   ;;  %v1527_v10 = vld [vmem:[%s1936_s5 + $0x10] sm:$0xff]   ;;  %v706_v48 = vunpack.c.l.s4 %v1603_v47  ;;  %vm915_vm1 = vcmask 1040384   ;;  %vm917_vm2 = vcmask 1041408  }
  0x19   : > { %457 = vadd.xlane.f32.xlu0 %v456_v2  ;;  %v1523_v4 = vld [vmem:[%s1936_s5] sm:$0xff]   ;;  %1468 = vmatprep.subr.msk.bf16.mxu0 %vm455_vm0, %v1522_v3  ;;  %v604_v8 = vsel %vm455_vm0, %v1525_v7, 0  ;;  %v607_v11 = vsel %vm455_vm0, %v1527_v10, 0  ;;  %v1528_v12 = vld [vmem:[%s1936_s5 + $0x58] sm:$0xff]   ;;  %v1532_v23 = vld [vmem:[%s1936_s5 + $0x68] sm:$0xff]   ;;  %v709_v56 = vshrl.u32 %v708_v49, 7 }
  0x1a   : > { %v601_v6 = vsel %vm455_vm0, %v1523_v4, 0  ;;  %v1529_v13 = vld [vmem:[%s1936_s5 + $0x18] sm:$0xff]   ;;  %v1530_v15 = vld [vmem:[%s1936_s5 + $0x60] sm:$0xff]   ;;  %v1533_v24 = vld [vmem:[%s1936_s5 + $0x28] sm:$0xff]   ;;  %v707_v55 = vunpack.c.0.s8 %v706_v48  ;;  %vm919_vm3 = vcmask 1042432   ;;  %vm921_vm4 = vcmask 1043456  }
  0x1b   : > { %1423 = vmatpush3.bf16.xpose.msra.mxu0 %v601_v6  ;;  %v610_v14 = vsel %vm455_vm0, %v1529_v13, 0  ;;  %v1531_v16 = vld [vmem:[%s1936_s5 + $0x20] sm:$0xff]   ;;  %v616_v25 = vsel %vm455_vm0, %v1533_v24, 0  ;;  %v1534_v26 = vld [vmem:[%s1936_s5 + $0x70] sm:$0xff]   ;;  %v1536_v29 = vld [vmem:[%s1936_s5 + $0x78] sm:$0xff]   ;;  %vm923_vm5 = vcmask 1044480  }
  0x1c   : > { %1469 = vmatprep.subr.msk.bf16.mxu0 %vm455_vm0, %v1524_v5  ;;  %v613_v17 = vsel %vm455_vm0, %v1531_v16, 0  ;;  %v1535_v27 = vld [vmem:[%s1936_s5 + $0x30] sm:$0xff]   ;;  %v1537_v30 = vld [vmem:[%s1936_s5 + $0x38] sm:$0xff]   ;;  %v1386_v36 = vld [vmem:[%s1932_s1] ss:$0 sm:$0xff]  ;;  %v1815_v60 = vsub.s32 %v707_v55, %v709_v56  ;;  %vm925_vm6 = vcmask 1045504  }
  0x1d   : > { %v619_v28 = vsel %vm455_vm0, %v1535_v27, 0  ;;  %v622_v31 = vsel %vm455_vm0, %v1537_v30, 0  ;;  %v1387_v38 = vld [vmem:[%s1933_s2] ss:$0 sm:$0xff]  ;;  %v1538_v42 = vld [vmem:[%s1937_s6 + $0x4] ss:$8 sps:$4 sm:$0xff]  }
  0x1e   : > { %v1540_v43 = vld [vmem:[%s1937_s6] ss:$8 sps:$4 sm:$0xff]   ;;  %v1541_v44 = vld [vmem:[%s1937_s6 + $0x14] ss:$8 sps:$4 sm:$0xff]   ;;  %1004 = vmatprep.subr.bf16.mxu1 %v1538_v42  ;;  %v1543_v45 = vld [vmem:[%s1937_s6 + $0x10] ss:$8 sps:$4 sm:$0xff]  }
  0x1f   : > { %1005 = vmatpush1.bf16.xpose.msra.mxu1 %v1540_v43  ;;  %v1804_v46 = vld [vmem:[%s1934_s3] sm:$0x1]  ;;  %v692_v52 = vld [vmem:[#allocation3] sm:$0x1]  ;;  %vm927_vm7 = vcmask 1046528   ;;  %vm1606_vm9 = vmmov 0  }
  0x20   : > { %1006 = vmatprep.subr.bf16.mxu1 %v1541_v44  ;;  %v1809_v50 = vld [vmem:[%s1935_s4] sm:$0x1]  ;;  %v697_v57 = vmul.f32 %v692_v52, %v1804_v46  ;;  %s1607_s13 = smov 96  }
  0x21   : > { %v691_v51 = vld [vmem:[#allocation2] sm:$0x1]  ;;  %v694_v54 = vmul.f32 %v692_v52, %v1809_v50 }
  0x22   : > { %v693_v53 = vmul.f32 %v691_v51, %v1804_v46  ;;  %v698_v58 = vmul.f32 %v691_v51, %v1809_v50 }
  0x23   : > { %1425 = vmatpush3.bf16.xpose.msra.mxu0 %v604_v8 }
  0x24   : > { %1470 = vmatprep.subr.msk.bf16.mxu0 %vm455_vm0, %v1526_v9  ;;  %v695_v59 = vsub.f32 %v693_v53, %v694_v54  ;;  %v699_v61 = vadd.f32 %v698_v58, %v697_v57 }
  0x27   : > { %1007 = vmatpush1.bf16.xpose.msra.mxu1 %v1543_v45 }
  0x2b   : > { %1427 = vmatpush3.bf16.xpose.msra.mxu0 %v607_v11 }
  0x2c   : > { %1471 = vmatprep.subr.msk.bf16.mxu0 %vm455_vm0, %v1528_v12 }
  0x33   : > { %1429 = vmatpush3.bf16.xpose.msra.mxu0 %v610_v14 }
  0x34   : > { %1472 = vmatprep.subr.msk.bf16.mxu0 %vm455_vm0, %v1530_v15  ;;  %v1824_v15 = vsub.s32 0, %v709_v56 }
  0x3b   : > { %1431 = vmatpush3.bf16.xpose.msra.mxu0 %v613_v17 }
  0x3c   : > { %1473 = vmatprep.subr.msk.bf16.mxu0 %vm455_vm0, %v1532_v23 }
  0x43   : > { %1433 = vmatpush3.bf16.xpose.msra.mxu0 %v616_v25 }
  0x44   : > { %1474 = vmatprep.subr.msk.bf16.mxu0 %vm455_vm0, %v1534_v26 }
  0x4b   : > { %1435 = vmatpush3.bf16.xpose.msra.mxu0 %v619_v28 }
  0x4c   : > { %1475 = vmatprep.subr.msk.bf16.mxu0 %vm455_vm0, %v1536_v29 }
  0x53   : > { %1437 = vmatpush3.bf16.xpose.msra.mxu0 %v622_v31 }
  0xa6   : > { %v458_v18 = vpop.xlane.xlu0 %457 }
  0xa7   : > { %v460_v19 = vmul.f32 0.03125, %v458_v18 }
  0xa9   : > { %v461_v20 = vsub.f32 %v452_v1, %v460_v19 }
  0xab   : > { %v462_v21 = vmul.f32 %v461_v20, %v461_v20 }
  0xad   : > { %v463_v22 = vsel %vm455_vm0, %v462_v21, 0.0 }
  0xae   : > { %464 = vadd.xlane.f32.xlu0 %v463_v22 }
 0x13b   : > { %v465_v32 = vpop.xlane.xlu0 %464 }
 0x13c   : > { %v466_v33 = vmul.f32 0.03125, %v465_v32 }
 0x13e   : > { %v467_v34 = vadd.f32 1e-05, %v466_v33 }
 0x140   : > { %1550 = vrsqrt.f32 %v467_v34 }
 0x14a   : > { %v1551_v35 = vpop.eup %1550 }
 0x14b   : > { %v469_v37 = vmul.f32 %v1551_v35, %v461_v20 }
 0x14d   : > { %v476_v39 = vmul.f32 %v1386_v36, %v469_v37 }
 0x14f   : > { %v1783_v40 = vadd.f32 %v1387_v38, %v476_v39 }
 0x151   : > { %v484_v41 = vpack.c.bf16 %v1783_v40, %v1783_v40 }
 0x153   : > { %1438 = vmatprep.mubr.msk.bf16.mxu0 %vm455_vm0, %v484_v41 }
 0x154   : > { %1439 = vmatmul.mubr.msk.bf16.vlgmr.msra.gmra.mrb[0].mxu0 %vm455_vm0, %v484_v41 }
 0x227   : > { %v682_v62 = vpop.f32.mrb[0].mxu0 }
 0x228   : > { %v696_v63 = vadd.f32 %v695_v59, %v682_v62  ;;  %v711_v0 = vrot.slane %v682_v62, %v1815_v60  ;;  %v684_v1 = vpop.f32.mrb[1].mxu0  ;;  %v784_v35 = vcombine.high %v682_v62, %v682_v62 }
 0x229   : > { %v700_v2 = vadd.f32 %v699_v61, %v684_v1  ;;  %v739_v3 = vrot.slane %v684_v1, %v1815_v60  ;;  %v686_v4 = vpop.f32.mrb[2].mxu0  ;;  %v804_v36 = vcombine.high %v684_v1, %v684_v1 }
 0x22a   : > { %v701_v5 = vmul.f32 %v696_v63, %v1804_v46  ;;  %v712_v6 = vcombine.high %v711_v0, %v711_v0  ;;  %v730_v7 = vmul.f32 %v696_v63, %v1809_v50  ;;  %v687_v8 = vpop.f32.mrb[3].mxu0  ;;  %v719_v17 = vrot.slane %v711_v0, %v1815_v60 }
 0x22b   : > { %v702_v9 = vmul.f32 %v700_v2, %v1809_v50  ;;  %v729_v10 = vmul.f32 %v700_v2, %v1804_v46  ;;  %v740_v11 = vcombine.high %v739_v3, %v739_v3  ;;  %v747_v19 = vrot.slane %v739_v3, %v1815_v60 }
 0x22c   : > { %v726_v12 = vrot.slane %v712_v6, %v1815_v60  ;;  %v760_v27 = vcombine.high %v719_v17, %v719_v17  ;;  %v791_v52 = vrot.slane %v784_v35, %v1815_v60  ;;  %v811_v55 = vrot.slane %v804_v36, %v1815_v60 }
 0x22d   : > { %v703_v13 = vsub.f32 %v701_v5, %v702_v9  ;;  %v731_v14 = vadd.f32 %v730_v7, %v729_v10  ;;  %v754_v16 = vrot.slane %v740_v11, %v1815_v60  ;;  %v766_v28 = vcombine.high %v747_v19, %v747_v19 }
 0x22e   : > { %v772_v44 = vcombine.high %v726_v12, %v726_v12  ;;  %v824_v5 = vcombine.high %v791_v52, %v791_v52  ;;  %v837_v8 = vcombine.high %v811_v55, %v811_v55 }
 0x22f   : > { %v728_v18 = vadd.f32 %v726_v12, %v703_v13  ;;  %v756_v20 = vadd.f32 %v754_v16, %v731_v14  ;;  %v778_v48 = vcombine.high %v754_v16, %v754_v16 }
 0x230   : > { %v831_v16 = vrot.slane %v824_v5, %v1815_v60  ;;  %v844_v19 = vrot.slane %v837_v8, %v1815_v60 }
 0x231   : > { %v757_v21 = vmul.f32 %v728_v18, %v1804_v46  ;;  %v764_v22 = vmul.f32 %v728_v18, %v1809_v50  ;;  %v758_v23 = vmul.f32 %v756_v20, %v1809_v50  ;;  %v763_v24 = vmul.f32 %v756_v20, %v1804_v46 }
 0x232   : > { %v877_v25 = vrot.slane %v728_v18, %v1824_v15  ;;  %v933_v26 = vrot.slane %v756_v20, %v1824_v15 }
 0x233   : > { %v759_v29 = vsub.f32 %v757_v21, %v758_v23  ;;  %v765_v30 = vadd.f32 %v764_v22, %v763_v24 }
 0x234   : > { %v916_v31 = vsel %vm915_vm1, %v696_v63, %v877_v25  ;;  %v971_v32 = vsel %vm915_vm1, %v700_v2, %v933_v26  ;;  %v798_v63 = vrot.slane %v791_v52, %v1815_v60  ;;  %v818_v2 = vrot.slane %v811_v55, %v1815_v60 }
 0x235   : > { %v762_v33 = vadd.f32 %v760_v27, %v759_v29  ;;  %v768_v34 = vadd.f32 %v766_v28, %v765_v30 }
 0x236   : > { %v850_v30 = vcombine.high %v798_v63, %v798_v63 }
 0x237   : > { %v769_v37 = vmul.f32 %v762_v33, %v1804_v46  ;;  %v770_v38 = vmul.f32 %v768_v34, %v1809_v50  ;;  %v775_v39 = vmul.f32 %v768_v34, %v1804_v46  ;;  %v776_v41 = vmul.f32 %v762_v33, %v1809_v50 }
 0x238   : > { %v883_v42 = vrot.slane %v762_v33, %v1824_v15  ;;  %v939_v43 = vrot.slane %v768_v34, %v1824_v15 }
 0x239   : > { %v771_v45 = vsub.f32 %v769_v37, %v770_v38  ;;  %v777_v47 = vadd.f32 %v776_v41, %v775_v39 }
 0x23a   : > { %v918_v49 = vsel %vm917_vm2, %v916_v31, %v883_v42  ;;  %v972_v51 = vsel %vm917_vm2, %v971_v32, %v939_v43  ;;  %v856_v31 = vcombine.high %v818_v2, %v818_v2 }
 0x23b   : > { %v774_v53 = vadd.f32 %v772_v44, %v771_v45  ;;  %v780_v54 = vadd.f32 %v778_v48, %v777_v47  ;;  %v868_v45 = vcombine.high %v844_v19, %v844_v19  ;;  %v862_v48 = vcombine.high %v831_v16, %v831_v16 }
 0x23d   : > { %v781_v56 = vmul.f32 %v774_v53, %v1804_v46  ;;  %v782_v57 = vmul.f32 %v780_v54, %v1809_v50  ;;  %v801_v58 = vmul.f32 %v780_v54, %v1804_v46  ;;  %v802_v59 = vmul.f32 %v774_v53, %v1809_v50 }
 0x23e   : > { %v945_v61 = vrot.slane %v780_v54, %v1824_v15  ;;  %v889_v62 = vrot.slane %v774_v53, %v1824_v15 }
 0x23f   : > { %v783_v0 = vsub.f32 %v781_v56, %v782_v57  ;;  %v803_v1 = vadd.f32 %v802_v59, %v801_v58  ;;  %v1409_v58 = vld [vmem:[%s1938_s7] ss:$0 sm:$0xff] }
 0x240   : > { %v973_v3 = vsel %vm919_vm3, %v972_v51, %v945_v61  ;;  %v920_v4 = vsel %vm919_vm3, %v918_v49, %v889_v62  ;;  %v1052_v62 = vmul.f32 %v1409_v58, %v1783_v40 }
 0x241   : > { %v800_v6 = vadd.f32 %v798_v63, %v783_v0  ;;  %v820_v7 = vadd.f32 %v818_v2, %v803_v1 }
 0x243   : > { %v821_v9 = vmul.f32 %v800_v6, %v1804_v46  ;;  %v822_v10 = vmul.f32 %v820_v7, %v1809_v50  ;;  %v834_v11 = vmul.f32 %v820_v7, %v1804_v46  ;;  %v835_v12 = vmul.f32 %v800_v6, %v1809_v50 }
 0x244   : > { %v951_v13 = vrot.slane %v820_v7, %v1824_v15  ;;  %v895_v14 = vrot.slane %v800_v6, %v1824_v15 }
 0x245   : > { %v823_v17 = vsub.f32 %v821_v9, %v822_v10  ;;  %v836_v18 = vadd.f32 %v835_v12, %v834_v11 }
 0x246   : > { %v974_v20 = vsel %vm921_vm4, %v973_v3, %v951_v13  ;;  %v922_v21 = vsel %vm921_vm4, %v920_v4, %v895_v14 }
 0x247   : > { %v833_v22 = vadd.f32 %v831_v16, %v823_v17  ;;  %v846_v23 = vadd.f32 %v844_v19, %v836_v18 }
 0x249   : > { %v848_v24 = vmul.f32 %v846_v23, %v1809_v50  ;;  %v847_v25 = vmul.f32 %v833_v22, %v1804_v46  ;;  %v853_v26 = vmul.f32 %v846_v23, %v1804_v46  ;;  %v854_v27 = vmul.f32 %v833_v22, %v1809_v50 }
 0x24a   : > { %v957_v28 = vrot.slane %v846_v23, %v1824_v15  ;;  %v901_v29 = vrot.slane %v833_v22, %v1824_v15  ;;  %v1604_v23 = vmov -1.0  }
 0x24b   : > { %v849_v60 = vsub.f32 %v847_v25, %v848_v24  ;;  %v855_v32 = vadd.f32 %v854_v27, %v853_v26 }
 0x24c   : > { %v975_v33 = vsel %vm923_vm5, %v974_v20, %v957_v28  ;;  %v924_v34 = vsel %vm923_vm5, %v922_v21, %v901_v29 }
 0x24d   : > { %v852_v35 = vadd.f32 %v850_v30, %v849_v60  ;;  %v858_v36 = vadd.f32 %v856_v31, %v855_v32  ;;  %v1544_v31 = vld [vmem:[%s1941_s10] sm:$0xff]   ;;  %v1605_v60 = vmov 0.0  }
 0x24e   : > { %1448 = vmatprep.subr.bf16.mxu1 %v1605_v60  ;;  %v1143_v32 = vsel %vm455_vm0, %v1544_v31, 0 }
 0x24f   : > { %v865_v37 = vmul.f32 %v858_v36, %v1804_v46  ;;  %v866_v38 = vmul.f32 %v852_v35, %v1809_v50  ;;  %v963_v39 = vrot.slane %v858_v36, %v1824_v15  ;;  %v859_v41 = vmul.f32 %v852_v35, %v1804_v46 }
 0x250   : > { %v860_v42 = vmul.f32 %v858_v36, %v1809_v50  ;;  %v907_v43 = vrot.slane %v852_v35, %v1824_v15 }
 0x251   : > { %v867_v44 = vadd.f32 %v866_v38, %v865_v37  ;;  %v976_v47 = vsel %vm925_vm6, %v975_v33, %v963_v39  ;;  %v1546_v39 = vld [vmem:[%s1941_s10 + $0x10] sm:$0xff]  }
 0x252   : > { %v861_v49 = vsub.f32 %v859_v41, %v860_v42  ;;  %v926_v51 = vsel %vm925_vm6, %v924_v34, %v907_v43  ;;  %v1149_v41 = vsel %vm455_vm0, %v1546_v39, 0  ;;  %v1547_v42 = vld [vmem:[%s1941_s10 + $0x18] sm:$0xff]  }
 0x253   : > { %v870_v52 = vadd.f32 %v868_v45, %v867_v44  ;;  %v1152_v43 = vsel %vm455_vm0, %v1547_v42, 0 }
 0x254   : > { %v864_v53 = vadd.f32 %v862_v48, %v861_v49  ;;  %v1410_v49 = vld [vmem:[%s1939_s8] ss:$0 sm:$0xff] }
 0x255   : > { %872 = vst [vmem:[#allocation3] sm:$0x1] %v870_v52  ;;  %v969_v54 = vrot.slane %v870_v52, %v1824_v15  ;;  %v1411_v52 = vld [vmem:[%s1940_s9] ss:$0 sm:$0xff] }
 0x256   : > { %871 = vst [vmem:[#allocation2] sm:$0x1] %v864_v53  ;;  %v913_v55 = vrot.slane %v864_v53, %v1824_v15 }
 0x257   : > { %v977_v46 = vsel %vm927_vm7, %v976_v47, %v969_v54 }
 0x258   : > { %v979_v56 = vpack.c.bf16 %v977_v46, %v977_v46  ;;  %v928_v50 = vsel %vm927_vm7, %v926_v51, %v913_v55  ;;  %v1548_v46 = vld [vmem:[%s1942_s11] sm:$0xff]  }
 0x259   : > { %v978_v57 = vpack.c.bf16 %v928_v50, %v928_v50  ;;  %v1549_v50 = vld [vmem:[%s1942_s11 + $0x8] sm:$0xff]  }
 0x25a   : > { %1036 = vmatprep.mubr.bf16.mxu1 %v979_v56  ;;  %v1244_v56 = vsel %vm455_vm0, %v1548_v46, 0 }
 0x25b   : > { %1037 = vmatmul.mubr.bf16.vlgmr.msra.gmra.mrb[0].mxu1 %v978_v57  ;;  %v1247_v57 = vsel %vm455_vm0, %v1549_v50, 0 }
 0x25c   : > { %1449 = vmatpush3.bf16.xpose.msra.mxu1 %v1143_v32  ;;  %1456 = vmatprep.mubr.msk.bf16.mxu1 %vm1606_vm9, %v1605_v60 }
 0x25d   : > { %1450 = vmatprep.subr.bf16.mxu1 %v1605_v60 }
 0x32e   : > { %v1038_v59 = vpop.f32.mrb[0].mxu1 }
 0x32f   : > { %v1044_v61 = vmul.f32 2.0, %v1038_v59  ;;  %v1040_v63 = vpop.f32.mrb[1].mxu1 }
 0x330   : > { %v1041_v0 = vpop.f32.mrb[2].mxu1 }
 0x331   : > { %v1053_v1 = vadd.f32 %v1052_v62, %v1044_v61  ;;  %v1042_v2 = vpop.f32.mrb[3].mxu1 }
 0x333   : > { %v1055_v3 = vmul.f32 0.70710677, %v1053_v1  ;;  %v1054_v26 = vmul.f32 0.5, %v1053_v1 }
 0x335   : > { %v1058_v15 = vand.u32 2147483647, %v1055_v3  ;;  %vm1056_vm8 = vcmp.ge.f32.partialorder %v1055_v3, 0.0 }
 0x336   : > { %v1057_v24 = vsel %vm1056_vm8, 1.0, %v1604_v23 }
 0x337   : > { %v1059_v4 = vmul.f32 0.3275911, %v1058_v15  ;;  %v1071_v6 = vsub.f32 0.0, %v1058_v15 }
 0x339   : > { %v1060_v5 = vadd.f32 1.0, %v1059_v4  ;;  %v1072_v8 = vmul.f32 %v1071_v6, %v1058_v15 }
 0x33b   : > { %1552 = vrcp.f32 %v1060_v5  ;;  %v1073_v11 = vmul.f32 1.442695, %v1072_v8 }
 0x33d   : > { %1554 = vpow2.f32 %v1073_v11 }
 0x345   : > { %v1553_v7 = vpop.eup %1552 }
 0x346   : > { %v1062_v9 = vmul.f32 1.0614054, %v1553_v7 }
 0x347   : > { %v1555_v20 = vpop.eup %1554 }
 0x348   : > { %v1063_v10 = vadd.f32 -1.4531521, %v1062_v9 }
 0x34a   : > { %v1064_v12 = vmul.f32 %v1553_v7, %v1063_v10 }
 0x34c   : > { %v1065_v13 = vadd.f32 1.4214138, %v1064_v12 }
 0x34e   : > { %v1066_v14 = vmul.f32 %v1553_v7, %v1065_v13 }
 0x350   : > { %v1067_v16 = vadd.f32 -0.28449672, %v1066_v14 }
 0x352   : > { %v1068_v17 = vmul.f32 %v1553_v7, %v1067_v16 }
 0x354   : > { %v1069_v18 = vadd.f32 0.2548296, %v1068_v17 }
 0x356   : > { %v1070_v19 = vmul.f32 %v1553_v7, %v1069_v18 }
 0x358   : > { %v1075_v21 = vmul.f32 %v1555_v20, %v1070_v19 }
 0x35a   : > { %v1076_v22 = vsub.f32 1.0, %v1075_v21 }
 0x35c   : > { %v1077_v25 = vmul.f32 %v1076_v22, %v1057_v24 }
 0x35e   : > { %v1078_v27 = vadd.f32 1.0, %v1077_v25 }
 0x360   : > { %v1079_v28 = vmul.f32 %v1078_v27, %v1054_v26 }
 0x362   : > { %v1080_v29 = vadd.f32 %v1079_v28, %v1783_v40  ;;  %v1545_v40 = vld [vmem:[%s1941_s10 + $0x8] sm:$0xff]  }
 0x363   : > { %v1146_v38 = vsel %vm455_vm0, %v1545_v40, 0 }
 0x364   : > { %v1083_v30 = vsel %vm455_vm0, %v1080_v29, 0.0  ;;  %1451 = vmatpush3.bf16.xpose.msra.mxu1 %v1146_v38 }
 0x365   : > { %1084 = vadd.xlane.f32.xlu1 %v1083_v30  ;;  %1452 = vmatprep.subr.bf16.mxu1 %v1605_v60 }
 0x36c   : > { %1453 = vmatpush3.bf16.xpose.msra.mxu1 %v1149_v41 }
 0x36d   : > { %1454 = vmatprep.subr.bf16.mxu1 %v1605_v60 }
 0x374   : > { %1455 = vmatpush3.bf16.xpose.msra.mxu1 %v1152_v43 }
 0x375   : > { %1460 = vmatprep.subr.bf16.mxu1 %v1605_v60 }
 0x3f2   : > { %v1085_v33 = vpop.xlane.xlu1 %1084 }
 0x3f3   : > { %v1086_v34 = vmul.f32 0.03125, %v1085_v33 }
 0x3f5   : > { %v1087_v35 = vsub.f32 %v1080_v29, %v1086_v34 }
 0x3f7   : > { %v1088_v36 = vmul.f32 %v1087_v35, %v1087_v35 }
 0x3f9   : > { %v1089_v37 = vsel %vm455_vm0, %v1088_v36, 0.0 }
 0x3fa   : > { %1090 = vadd.xlane.f32.xlu1 %v1089_v37 }
 0x487   : > { %v1091_v44 = vpop.xlane.xlu1 %1090 }
 0x488   : > { %v1092_v45 = vmul.f32 0.03125, %v1091_v44 }
 0x48a   : > { %v1093_v47 = vadd.f32 1e-05, %v1092_v45 }
 0x48c   : > { %1556 = vrsqrt.f32 %v1093_v47 }
 0x496   : > { %v1557_v48 = vpop.eup %1556 }
 0x497   : > { %v1095_v51 = vmul.f32 %v1557_v48, %v1087_v35 }
 0x499   : > { %v1102_v53 = vmul.f32 %v1410_v49, %v1095_v51 }
 0x49b   : > { %v1109_v54 = vadd.f32 %v1411_v52, %v1102_v53 }
 0x49d   : > { %v1110_v55 = vpack.c.bf16 %v1109_v54, %v1109_v54 }
 0x49f   : > { %1457 = vmatmul.mubr.msk.bf16.vlgmr.msra.gmra.mrb[4].mxu1 %vm455_vm0, %v1110_v55 }
 0x4a0   : > { %1464 = vmatprep.mubr.msk.bf16.mxu1 %vm1606_vm9, %v1605_v60  ;;  %1461 = vmatpush3.bf16.xpose.msra.mxu1 %v1244_v56 }
 0x4a1   : > { %1462 = vmatprep.subr.bf16.mxu1 %v1605_v60 }
 0x4a8   : > { %1463 = vmatpush3.bf16.xpose.msra.mxu1 %v1247_v57 }
 0x572   : > { %v1188_v58 = vpop.f32.mrb[4].mxu1 }
 0x573   : > { %v1195_v59 = vmul.f32 0.70710677, %v1188_v58  ;;  %v1458_v61 = vpop.f32.mrb[5].mxu1  ;;  %v1194_v21 = vmul.f32 0.5, %v1188_v58 }
 0x574   : > { %v1191_v62 = vpop.f32.mrb[6].mxu1 }
 0x575   : > { %v1198_v63 = vand.u32 2147483647, %v1195_v59  ;;  %v1459_v0 = vpop.f32.mrb[7].mxu1  ;;  %vm1196_vm10 = vcmp.ge.f32.partialorder %v1195_v59, 0.0 }
 0x576   : > { %v1197_v19 = vsel %vm1196_vm10, 1.0, %v1604_v23 }
 0x577   : > { %v1199_v1 = vmul.f32 0.3275911, %v1198_v63  ;;  %v1211_v3 = vsub.f32 0.0, %v1198_v63 }
 0x579   : > { %v1200_v2 = vadd.f32 1.0, %v1199_v1  ;;  %v1212_v4 = vmul.f32 %v1211_v3, %v1198_v63 }
 0x57b   : > { %1558 = vrcp.f32 %v1200_v2  ;;  %v1213_v7 = vmul.f32 1.442695, %v1212_v4 }
 0x57d   : > { %1560 = vpow2.f32 %v1213_v7 }
 0x585   : > { %v1559_v15 = vpop.eup %1558 }
 0x586   : > { %v1202_v5 = vmul.f32 1.0614054, %v1559_v15 }
 0x587   : > { %v1561_v16 = vpop.eup %1560 }
 0x588   : > { %v1203_v6 = vadd.f32 -1.4531521, %v1202_v5 }
 0x58a   : > { %v1204_v8 = vmul.f32 %v1559_v15, %v1203_v6 }
 0x58c   : > { %v1205_v9 = vadd.f32 1.4214138, %v1204_v8 }
 0x58e   : > { %v1206_v10 = vmul.f32 %v1559_v15, %v1205_v9 }
 0x590   : > { %v1207_v11 = vadd.f32 -0.28449672, %v1206_v10 }
 0x592   : > { %v1208_v12 = vmul.f32 %v1559_v15, %v1207_v11 }
 0x594   : > { %v1209_v13 = vadd.f32 0.2548296, %v1208_v12 }
 0x596   : > { %v1210_v14 = vmul.f32 %v1559_v15, %v1209_v13 }
 0x598   : > { %v1215_v17 = vmul.f32 %v1561_v16, %v1210_v14 }
 0x59a   : > { %v1216_v18 = vsub.f32 1.0, %v1215_v17 }
 0x59c   : > { %v1217_v20 = vmul.f32 %v1216_v18, %v1197_v19 }
 0x59e   : > { %v1218_v22 = vadd.f32 1.0, %v1217_v20 }
 0x5a0   : > { %v1219_v24 = vmul.f32 %v1218_v22, %v1194_v21 }
 0x5a2   : > { %1221 = vrot.lane.b32.xlu0 %v1219_v24, %s1607_s13 }
 0x614   : > { %v1222_v25 = vpop.permute.xlu0 %1221 }
 0x615   : > { %v1224_v26 = vmul.f32 %v1222_v25, %v1188_v58 }
 0x617   : > { %v1225_v27 = vpack.c.bf16 %v1224_v26, %v1224_v26 }
 0x619   : > { %1465 = vmatmul.mubr.msk.bf16.vlgmr.msra.gmra.mrb[8].mxu1 %vm455_vm0, %v1225_v27 }
 0x6ec   : > { %v1283_v28 = vpop.f32.mrb[8].mxu1 }
 0x6ed   : > { %v1284_v29 = vadd.f32 %v1283_v28, %v1109_v54  ;;  %v1466_v30 = vpop.f32.mrb[9].mxu1 }
 0x6ee   : > { %v1286_v31 = vpop.f32.mrb[10].mxu1 }
 0x6ef   : > { %1289 = vst.msk [vmem:[%s1709_s19] sm:$0xff] %vm455_vm0, %v1284_v29  ;;  %v1467_v60 = vpop.f32.mrb[11].mxu1 }
 0x6f0 PF: > { %s22_s25 = sadd.s32 1, %s1600_s25   ;;  %s1944_s21 = smov %s1592_s23 }
 0x6f1   : > { %p19_p8 = scmp.ge.s32.totalorder %s22_s25, 10   ;;  %s1945_s22 = smov %s1596_s24 }
 0x6f2   : > { %s1946_s23 = smov %s1949_s26  ;;  %s1947_s24 = smov %s1953_s27 }
 0x6f3   :  { %21 = sbr.rel (!%p19_p8) target bundleno = 3 (0x3), region = 102 }

</bundles_post_ra>
